<compile_context>
chip_gen: v5e
topology: v5e:2x2
jax: 0.10.0
libtpu: 0.0.40
codegen_flags: <defaults>
</compile_context>

<pallas_src>
import functools

import jax
import jax.numpy as jnp
from jax.experimental import pallas as pl
from jax.experimental.pallas import tpu as pltpu

_VMEM_LIMIT = 32 * 1024 * 1024


# ---------------------------------------------------------------------------
# Banded-weight construction (runs once at model init, never inside kernels)
# ---------------------------------------------------------------------------

def _col_band_s2(w_tap, w_in):
    """Column band for one tap-row of a 3x3 / stride-2 / pad-1 conv.

    w_tap: (3, Cin, Cout) = w[ki].  Returns (w_in*Cin, (w_in//2)*Cout) with
    M[icol*Cin+ci, oc*Cout+co] = sum_{kj: 2*oc+kj-1 == icol} w_tap[kj, ci, co].
    """
    _, cin, cout = w_tap.shape
    ow = w_in // 2
    d = jnp.zeros((w_in, cin, ow, cout), jnp.float32)
    cols = jnp.arange(ow)
    for kj in range(3):
        icol = 2 * cols + kj - 1
        valid = (icol >= 0) & (icol < w_in)
        icol_c = jnp.clip(icol, 0, w_in - 1)
        upd = jnp.where(valid[:, None, None],
                        jnp.broadcast_to(w_tap[kj].astype(jnp.float32),
                                         (ow, cin, cout)), 0.0)
        d = d.at[icol_c, :, cols, :].add(upd)
    return d.reshape(w_in * cin, ow * cout)


def _col_band_up2(w_tap, w_src):
    """Column band for one tap-row of a 2x nearest upsample + 3x3/s1/pad1 conv.

    w_tap: (3, Cin, Cout).  Returns (w_src*Cin, (2*w_src)*Cout) with
    M[src*Cin+ci, v*Cout+co] = sum_{kj valid} w_tap[kj, ci, co], where
    n = v + kj is the padded upsampled column (valid for 1<=n<=2*w_src) and
    src = (n-1)//2 is the source column it replicates.
    """
    _, cin, cout = w_tap.shape
    ow = 2 * w_src
    d = jnp.zeros((w_src, cin, ow, cout), jnp.float32)
    cols = jnp.arange(ow)
    for kj in range(3):
        n = cols + kj
        valid = (n >= 1) & (n <= 2 * w_src)
        src = jnp.clip((n - 1) // 2, 0, w_src - 1)
        upd = jnp.where(valid[:, None, None],
                        jnp.broadcast_to(w_tap[kj].astype(jnp.float32),
                                         (ow, cin, cout)), 0.0)
        d = d.at[src, :, cols, :].add(upd)
    return d.reshape(w_src * cin, ow * cout)


# ---------------------------------------------------------------------------
# Fused encoder kernel:  conv/s2 -> conv/s2 -> flatten -> [mu|logvar] -> z
# ---------------------------------------------------------------------------

def _encoder_kernel(xq_ref, eps_ref, w1_ref, b1_ref, w2_ref, b2_ref,
                    wml_ref, bml_ref, mlz_ref, xp1_ref, xp2_ref,
                    *, z_dim, n_rows, feat_row):
    nq = n_rows
    # --- conv1 (3x3, stride 2, pad 1): quad-row operand, ONE MXU dot --------
    xp1_ref[0:1, :] = jnp.zeros((1, xp1_ref.shape[1]), xp1_ref.dtype)   # top halo
    xp1_ref[1:nq + 1, :] = xq_ref[0]
    a1 = jnp.concatenate([xp1_ref[1:nq + 1, :], xp1_ref[0:nq, :]],
                         axis=1).astype(jnp.bfloat16)                   # (nq, 2*qw)
    h1 = jnp.maximum(
        jnp.dot(a1, w1_ref[...], preferred_element_type=jnp.float32)
        + b1_ref[...], 0.0)                                             # pair rows

    # --- conv2 (3x3, stride 2, pad 1): pair-row operand, ONE MXU dot --------
    xp2_ref[0:1, :] = jnp.zeros((1, xp2_ref.shape[1]), xp2_ref.dtype)
    xp2_ref[1:nq + 1, :] = h1
    a2 = jnp.concatenate([xp2_ref[1:nq + 1, :], xp2_ref[0:nq, :]],
                         axis=1).astype(jnp.bfloat16)                   # (nq, 2*pw)
    h2 = jnp.maximum(
        jnp.dot(a2, w2_ref[...], preferred_element_type=jnp.float32)
        + b2_ref[...], 0.0)                                             # (nq, feat_row)

    # --- fused fc_mu / fc_logvar head (row-blocked, no in-kernel reshape) ---
    ml = bml_ref[...]                                                   # (1, 2Z)
    for r in range(nq):
        ml = ml + jnp.dot(h2[r:r + 1, :].astype(jnp.bfloat16),
                          wml_ref[r * feat_row:(r + 1) * feat_row, :],
                          preferred_element_type=jnp.float32)
    mu = ml[:, 0:z_dim]
    logvar = ml[:, z_dim:2 * z_dim]
    # reparameterize (exp runs on the EUP slot, essentially free)
    z = mu + eps_ref[0] * jnp.exp(0.5 * logvar)
    mlz_ref[0] = jnp.concatenate([mu, logvar, z], axis=1)               # one store


# ---------------------------------------------------------------------------
# Fused decoder kernel: dec_fc -> up2x+conv -> up2x+conv -> sigmoid
# ---------------------------------------------------------------------------

def _decoder_kernel(z_ref, wfc_ref, bfc_ref, wd1_ref, bd1_ref, wd2_ref, bd2_ref,
                    o_ref, xd1_ref, xd2_ref, *, n_rows, dec_row):
    s = n_rows
    # --- dec_fc: z -> feature map, ReLU (z never re-read from HBM elsewhere)
    h0 = jnp.maximum(
        jnp.dot(z_ref[0].astype(jnp.bfloat16), wfc_ref[...],
                preferred_element_type=jnp.float32) + bfc_ref[...], 0.0)  # (1, feat)
    # scatter the s spatial rows into the halo scratch (rows 0 / s+1 are pad)
    xd1_ref[0:1, :] = jnp.zeros((1, xd1_ref.shape[1]), xd1_ref.dtype)
    xd1_ref[s + 1:s + 2, :] = jnp.zeros((1, xd1_ref.shape[1]), xd1_ref.dtype)
    for r in range(s):
        xd1_ref[1 + r:2 + r, :] = h0[:, r * dec_row:(r + 1) * dec_row]

    # --- fused 2x nearest upsample + 3x3 conv (c2 -> c1), ReLU: ONE dot -----
    a1 = jnp.concatenate([xd1_ref[0:s, :], xd1_ref[1:s + 1, :],
                          xd1_ref[2:s + 2, :]], axis=1).astype(jnp.bfloat16)
    h1 = jnp.maximum(
        jnp.dot(a1, wd1_ref[...], preferred_element_type=jnp.float32)
        + bd1_ref[...], 0.0)                                # pair rows of 2s x 2s x c1

    xd2_ref[0:1, :] = jnp.zeros((1, xd2_ref.shape[1]), xd2_ref.dtype)
    xd2_ref[s + 1:s + 2, :] = jnp.zeros((1, xd2_ref.shape[1]), xd2_ref.dtype)
    xd2_ref[1:s + 1, :] = h1

    # --- fused 2x nearest upsample + 3x3 conv (c1 -> C), sigmoid: ONE dot ---
    a2 = jnp.concatenate([xd2_ref[1:s + 1, :], xd2_ref[0:s, :],
                          xd2_ref[2:s + 2, :]], axis=1).astype(jnp.bfloat16)
    y = (jnp.dot(a2, wd2_ref[...], preferred_element_type=jnp.float32)
         + bd2_ref[...])
    o_ref[0] = jax.nn.sigmoid(y)                            # lane-dense (s, 4*H*C) store


# ---------------------------------------------------------------------------
# BetaVAE_B (forward only)
# ---------------------------------------------------------------------------

class BetaVAEB:
    def __init__(self, input_dim, in_channels, z_dim, gamma=100.0, C_max=25.0,
                 C_stop_iter=100000, *, key):
        assert input_dim % 4 == 0
        H, C = input_dim, in_channels
        c1, c2 = 16, 32
        s = H // 4
        feat = c2 * s * s
        self.input_dim, self.in_channels, self.z_dim = H, C, z_dim
        self.gamma, self.C_max, self.C_stop_iter = gamma, C_max, C_stop_iter
        self.c1, self.c2, self.s, self.feat = c1, c2, s, feat

        ks = jax.random.split(key, 8)
        w_enc1 = 0.02 * jax.random.normal(ks[0], (3, 3, C, c1), jnp.float32)
        b_enc1 = jnp.zeros((c1,), jnp.float32)
        w_enc2 = 0.02 * jax.random.normal(ks[1], (3, 3, c1, c2), jnp.float32)
        b_enc2 = jnp.zeros((c2,), jnp.float32)
        w_mu = 0.02 * jax.random.normal(ks[2], (feat, z_dim), jnp.float32)
        b_mu = jnp.zeros((z_dim,), jnp.float32)
        w_lv = 0.02 * jax.random.normal(ks[3], (feat, z_dim), jnp.float32)
        b_lv = jnp.zeros((z_dim,), jnp.float32)
        w_fc = 0.02 * jax.random.normal(ks[4], (z_dim, feat), jnp.float32)
        b_fc = jnp.zeros((feat,), jnp.float32)
        w_dec1 = 0.02 * jax.random.normal(ks[5], (3, 3, c2, c1), jnp.float32)
        b_dec1 = jnp.zeros((c1,), jnp.float32)
        w_dec2 = 0.02 * jax.random.normal(ks[6], (3, 3, c1, C), jnp.float32)
        b_dec2 = jnp.zeros((C,), jnp.float32)

        bf = jnp.bfloat16
        # ---- encoder conv1: quad-row banded weight (8*H*C, H*c1) ----------
        s0, s1_, s2_ = (_col_band_s2(w_enc1[ki], H) for ki in range(3))
        zb = jnp.zeros_like(s0)
        self.w1q = jnp.concatenate([
            jnp.concatenate([s1_, s2_, zb, zb, zb, zb, zb, s0], axis=0),  # even rows
            jnp.concatenate([zb, s0, s1_, s2_, zb, zb, zb, zb], axis=0),  # odd rows
        ], axis=1).astype(bf)
        self.b1q = jnp.tile(b_enc1, H).reshape(1, H * c1)

        # ---- encoder conv2: pair-row banded weight (2*H*c1, s*c2) ---------
        t0, t1_, t2_ = (_col_band_s2(w_enc2[ki], H // 2) for ki in range(3))
        zb = jnp.zeros_like(t0)
        self.w2q = jnp.concatenate([t1_, t2_, zb, t0], axis=0).astype(bf)
        self.b2q = jnp.tile(b_enc2, s).reshape(1, s * c2)

        # ---- fused latent head ---------------------------------------------
        self.wml = jnp.concatenate([w_mu, w_lv], axis=1).astype(bf)       # (feat, 2Z)
        self.bml = jnp.concatenate([b_mu, b_lv]).reshape(1, 2 * z_dim)

        # ---- decoder dense ---------------------------------------------------
        self.wfc = w_fc.astype(bf)                                        # (Z, feat)
        self.bfc = b_fc.reshape(1, feat)

        # ---- decoder up-conv1 banded weight (3*s*c2, 4*s*c1) ----------------
        m0, m1_, m2_ = (_col_band_up2(w_dec1[ki], s) for ki in range(3))
        zb = jnp.zeros_like(m0)
        self.wd1 = jnp.concatenate([
            jnp.concatenate([m0, m1_ + m2_, zb], axis=0),                 # even rows
            jnp.concatenate([zb, m0 + m1_, m2_], axis=0),                 # odd rows
        ], axis=1).astype(bf)
        self.bd1 = jnp.tile(b_dec1, 4 * s).reshape(1, 4 * s * c1)

        # ---- decoder up-conv2 banded weight (6*2*s*c1, 4*H*C) ---------------
        u0, u1_, u2_ = (_col_band_up2(w_dec2[ki], 2 * s) for ki in range(3))
        zb = jnp.zeros_like(u0)
        self.wd2 = jnp.concatenate([
            jnp.concatenate([u1_ + u2_, zb, zb, u0, zb, zb], axis=0),     # out row 4q
            jnp.concatenate([u0 + u1_, u2_, zb, zb, zb, zb], axis=0),     # out row 4q+1
            jnp.concatenate([u0, u1_ + u2_, zb, zb, zb, zb], axis=0),     # out row 4q+2
            jnp.concatenate([zb, u0 + u1_, zb, zb, u2_, zb], axis=0),     # out row 4q+3
        ], axis=1).astype(bf)
        self.bd2 = jnp.tile(b_dec2, 4 * H).reshape(1, 4 * H * C)

    # --- fused encoder pallas_call ------------------------------------------
    def _encode_call(self, xq, eps):
        B = xq.shape[0]
        H, C, c1, c2, s, Z = (self.input_dim, self.in_channels, self.c1,
                              self.c2, self.s, self.z_dim)
        qw = 4 * H * C              # quad-row width
        pw = H * c1                 # conv1 pair-row output width
        n2 = s * c2                 # conv2 output row width
        kernel = functools.partial(_encoder_kernel, z_dim=Z, n_rows=s, feat_row=n2)
        flops = B * (2 * s * (2 * qw) * pw + 2 * s * (2 * pw) * n2
                     + 2 * s * n2 * 2 * Z)
        bytes_acc = (4 * xq.size + 4 * eps.size + 4 * B * 3 * Z
                     + 2 * (self.w1q.size + self.w2q.size + self.wml.size)
                     + 4 * (self.b1q.size + self.b2q.size + self.bml.size))
        return pl.pallas_call(
            kernel,
            out_shape=jax.ShapeDtypeStruct((B, 1, 3 * Z), jnp.float32),
            grid_spec=pltpu.PrefetchScalarGridSpec(
                num_scalar_prefetch=0,
                grid=(B,),
                in_specs=[
                    pl.BlockSpec((1, s, qw), lambda b: (b, 0, 0)),
                    pl.BlockSpec((1, 1, Z), lambda b: (b, 0, 0)),
                    pl.BlockSpec((2 * qw, pw), lambda b: (0, 0)),
                    pl.BlockSpec((1, pw), lambda b: (0, 0)),
                    pl.BlockSpec((2 * pw, n2), lambda b: (0, 0)),
                    pl.BlockSpec((1, n2), lambda b: (0, 0)),
                    pl.BlockSpec((self.feat, 2 * Z), lambda b: (0, 0)),
                    pl.BlockSpec((1, 2 * Z), lambda b: (0, 0)),
                ],
                out_specs=pl.BlockSpec((1, 1, 3 * Z), lambda b: (b, 0, 0)),
                scratch_shapes=[
                    pltpu.VMEM((s + 1, qw), jnp.float32),
                    pltpu.VMEM((s + 1, pw), jnp.float32),
                ],
            ),
            compiler_params=pltpu.CompilerParams(
                dimension_semantics=("parallel",),
                vmem_limit_bytes=_VMEM_LIMIT,
            ),
            cost_estimate=pl.CostEstimate(
                flops=flops, transcendentals=B * Z, bytes_accessed=bytes_acc),
        )(xq, eps, self.w1q, self.b1q, self.w2q, self.b2q, self.wml, self.bml)

    # --- fused decoder pallas_call ------------------------------------------
    def _decode_call(self, z3):
        B = z3.shape[0]
        H, C, c1, c2, s, Z = (self.input_dim, self.in_channels, self.c1,
                              self.c2, self.s, self.z_dim)
        dw = s * c2                 # dec_fc spatial row width
        pw1 = 4 * s * c1            # up-conv1 pair-row output width
        ow = 4 * H * C              # final output width per operand row
        kernel = functools.partial(_decoder_kernel, n_rows=s, dec_row=dw)
        flops = B * (2 * Z * self.feat + 2 * s * (3 * dw) * pw1
                     + 2 * s * (3 * pw1) * ow)
        bytes_acc = (4 * z3.size + 4 * B * s * ow
                     + 2 * (self.wfc.size + self.wd1.size + self.wd2.size)
                     + 4 * (self.bfc.size + self.bd1.size + self.bd2.size))
        return pl.pallas_call(
            kernel,
            out_shape=jax.ShapeDtypeStruct((B, s, ow), jnp.float32),
            grid_spec=pltpu.PrefetchScalarGridSpec(
                num_scalar_prefetch=0,
                grid=(B,),
                in_specs=[
                    pl.BlockSpec((1, 1, Z), lambda b: (b, 0, 0)),
                    pl.BlockSpec((Z, self.feat), lambda b: (0, 0)),
                    pl.BlockSpec((1, self.feat), lambda b: (0, 0)),
                    pl.BlockSpec((3 * dw, pw1), lambda b: (0, 0)),
                    pl.BlockSpec((1, pw1), lambda b: (0, 0)),
                    pl.BlockSpec((3 * pw1, ow), lambda b: (0, 0)),
                    pl.BlockSpec((1, ow), lambda b: (0, 0)),
                ],
                out_specs=pl.BlockSpec((1, s, ow), lambda b: (b, 0, 0)),
                scratch_shapes=[
                    pltpu.VMEM((s + 2, dw), jnp.float32),
                    pltpu.VMEM((s + 2, pw1), jnp.float32),
                ],
            ),
            compiler_params=pltpu.CompilerParams(
                dimension_semantics=("parallel",),
                vmem_limit_bytes=_VMEM_LIMIT,
            ),
            cost_estimate=pl.CostEstimate(
                flops=flops, transcendentals=B * s * ow, bytes_accessed=bytes_acc),
        )(z3, self.wfc, self.bfc, self.wd1, self.bd1, self.wd2, self.bd2)

    # --- wrapper data plumbing (one fused relayout copy under jit) ----------
    def _to_quad_rows(self, x_nchw):
        B = x_nchw.shape[0]
        H, C = self.input_dim, self.in_channels
        return jnp.transpose(x_nchw, (0, 2, 3, 1)).reshape(B, H // 4, 4 * H * C)

    # --- public API (mirrors the PyTorch module) -----------------------------
    def encode(self, x_nchw):
        B = x_nchw.shape[0]
        Z = self.z_dim
        eps = jnp.zeros((B, 1, Z), jnp.float32)
        mlz = self._encode_call(self._to_quad_rows(x_nchw), eps)
        return mlz[:, 0, 0:Z], mlz[:, 0, Z:2 * Z]

    def reparameterize(self, mu, logvar, eps):
        # (inside forward() this is fused into the encoder kernel's epilogue)
        return mu + eps * jnp.exp(0.5 * logvar)

    def decode(self, z):
        B = z.shape[0]
        y = self._decode_call(z.reshape(B, 1, self.z_dim))
        x = y.reshape(B, self.input_dim, self.input_dim, self.in_channels)
        return jnp.transpose(x, (0, 3, 1, 2))

    def forward(self, x_nchw, rng_key):
        B = x_nchw.shape[0]
        Z = self.z_dim
        xq = self._to_quad_rows(x_nchw)
        eps = jax.random.normal(rng_key, (B, 1, Z), jnp.float32)
        mlz = self._encode_call(xq, eps)                 # (B, 1, [mu|logvar|z])
        mu = mlz[:, 0, 0:Z]
        logvar = mlz[:, 0, Z:2 * Z]
        z3 = mlz[:, :, 2 * Z:3 * Z]                      # (B, 1, Z)
        y = self._decode_call(z3)                        # (B, H//4, 4*H*C)
        x_recon = jnp.transpose(
            y.reshape(B, self.input_dim, self.input_dim, self.in_channels),
            (0, 3, 1, 2))
        return [x_recon, x_nchw, mu, logvar]

    def sample(self, n_samples, rng_key):
        z = jax.random.normal(rng_key, (n_samples, self.z_dim), jnp.float32)
        return self.decode(z)

    def get_latent_dim(self):
        return self.z_dim


# ---------------------------------------------------------------------------
if __name__ == "__main__":
    key = jax.random.PRNGKey(0)
    k_param, k_data, k_eps = jax.random.split(key, 3)

    B, C, HW, Z = 2, 4, 16, 8
    model = BetaVAEB(input_dim=HW, in_channels=C, z_dim=Z,
                     gamma=100.0, C_max=25.0, C_stop_iter=100000, key=k_param)
    x = jax.random.normal(k_data, (B, C, HW, HW), dtype=jnp.float32)

    fwd = jax.jit(model.forward)
    x_recon, x_out, mu, logvar = fwd(x, k_eps)
    jax.block_until_ready((x_recon, x_out, mu, logvar))

    assert x_recon.shape == (B, C, HW, HW), x_recon.shape
    assert x_out.shape == (B, C, HW, HW), x_out.shape
    assert mu.shape == (B, Z) and logvar.shape == (B, Z)
    assert bool(jnp.all(jnp.isfinite(x_recon)))
    assert bool(jnp.all(jnp.isfinite(mu))) and bool(jnp.all(jnp.isfinite(logvar)))
    print("KERNEL_OK")
</pallas_src>

<mosaic_0001>
module attributes {stable_mosaic.version = 11 : i64} {
  func.func @_decoder_kernel(%arg0: i32, %arg1: memref<1x1x8xf32, #tpu.memory_space<vmem>>, %arg2: memref<8x512xbf16, #tpu.memory_space<vmem>>, %arg3: memref<1x512xf32, #tpu.memory_space<vmem>>, %arg4: memref<384x256xbf16, #tpu.memory_space<vmem>>, %arg5: memref<1x256xf32, #tpu.memory_space<vmem>>, %arg6: memref<768x256xbf16, #tpu.memory_space<vmem>>, %arg7: memref<1x256xf32, #tpu.memory_space<vmem>>, %arg8: memref<1x4x256xf32, #tpu.memory_space<vmem>>, %arg9: memref<6x128xf32, #tpu.memory_space<vmem>>, %arg10: memref<6x256xf32, #tpu.memory_space<vmem>>) attributes {dimension_semantics = [#tpu.dimension_semantics<parallel>], iteration_bounds = array<i64: 2>, scalar_prefetch = 0 : i64, scratch_operands = 2 : i64, tpu.core_type = #tpu.core_type<tc>, window_params = [{transform_indices = @transform_0, window_bounds = array<i64: 1, 1, 8>}, {pipeline_mode = #tpu.pipeline_mode<synchronous>, transform_indices = @transform_1, window_bounds = array<i64: 8, 512>}, {pipeline_mode = #tpu.pipeline_mode<synchronous>, transform_indices = @transform_2, window_bounds = array<i64: 1, 512>}, {pipeline_mode = #tpu.pipeline_mode<synchronous>, transform_indices = @transform_3, window_bounds = array<i64: 384, 256>}, {pipeline_mode = #tpu.pipeline_mode<synchronous>, transform_indices = @transform_4, window_bounds = array<i64: 1, 256>}, {pipeline_mode = #tpu.pipeline_mode<synchronous>, transform_indices = @transform_5, window_bounds = array<i64: 768, 256>}, {pipeline_mode = #tpu.pipeline_mode<synchronous>, transform_indices = @transform_6, window_bounds = array<i64: 1, 256>}, {transform_indices = @transform_7, window_bounds = array<i64: 1, 4, 256>}]} {
    %c0 = arith.constant 0 : index
    %c0_0 = arith.constant 0 : index
    %c0_1 = arith.constant 0 : index
    %0 = vector.load %arg1[%c0, %c0_0, %c0_1] : memref<1x1x8xf32, #tpu.memory_space<vmem>>, vector<1x1x8xf32>
    %1 = vector.shape_cast %0 : vector<1x1x8xf32> to vector<1x8xf32>
    %2 = arith.truncf %1 : vector<1x8xf32> to vector<1x8xbf16>
    %c0_2 = arith.constant 0 : index
    %c0_3 = arith.constant 0 : index
    %3 = vector.load %arg2[%c0_2, %c0_3] : memref<8x512xbf16, #tpu.memory_space<vmem>>, vector<8x512xbf16>
    %cst = arith.constant dense<0.000000e+00> : vector<1x512xf32>
    %4 = tpu.matmul %2, %3, %cst {dimension_numbers = #tpu.dot_dimension_numbers<[1], [0], [0], [1], [0, 0, 1, 1], [], []>} : vector<1x8xbf16>, vector<8x512xbf16>, vector<1x512xf32> -> vector<1x512xf32>
    %c0_4 = arith.constant 0 : index
    %c0_5 = arith.constant 0 : index
    %5 = vector.load %arg3[%c0_4, %c0_5] : memref<1x512xf32, #tpu.memory_space<vmem>>, vector<1x512xf32>
    %6 = arith.addf %4, %5 : vector<1x512xf32>
    %cst_6 = arith.constant 0.000000e+00 : f32
    %7 = vector.broadcast %cst_6 : f32 to vector<1x512xf32>
    %8 = arith.maximumf %6, %7 : vector<1x512xf32>
    %cst_7 = arith.constant 0.000000e+00 : f32
    %9 = vector.broadcast %cst_7 : f32 to vector<1x128xf32>
    %c0_8 = arith.constant 0 : index
    %c0_9 = arith.constant 0 : index
    %10 = vector.load %arg9[%c0_8, %c0_9] : memref<6x128xf32, #tpu.memory_space<vmem>>, vector<1x128xf32>
    tpu.vector_store %arg9[%c0_8, %c0_9], %9 {strides = array<i32>} : memref<6x128xf32, #tpu.memory_space<vmem>>, vector<1x128xf32>,
    %cst_10 = arith.constant 0.000000e+00 : f32
    %11 = vector.broadcast %cst_10 : f32 to vector<1x128xf32>
    %c5 = arith.constant 5 : index
    %c0_11 = arith.constant 0 : index
    %12 = vector.load %arg9[%c5, %c0_11] : memref<6x128xf32, #tpu.memory_space<vmem>>, vector<1x128xf32>
    tpu.vector_store %arg9[%c5, %c0_11], %11 {strides = array<i32>} : memref<6x128xf32, #tpu.memory_space<vmem>>, vector<1x128xf32>,
    %13 = vector.extract_strided_slice %8 {offsets = [0, 0], sizes = [1, 128], strides = [1, 1]} : vector<1x512xf32> to vector<1x128xf32>
    %c1 = arith.constant 1 : index
    %c0_12 = arith.constant 0 : index
    %14 = vector.load %arg9[%c1, %c0_12] : memref<6x128xf32, #tpu.memory_space<vmem>>, vector<1x128xf32>
    tpu.vector_store %arg9[%c1, %c0_12], %13 {strides = array<i32>} : memref<6x128xf32, #tpu.memory_space<vmem>>, vector<1x128xf32>,
    %15 = vector.extract_strided_slice %8 {offsets = [0, 128], sizes = [1, 128], strides = [1, 1]} : vector<1x512xf32> to vector<1x128xf32>
    %c2 = arith.constant 2 : index
    %c0_13 = arith.constant 0 : index
    %16 = vector.load %arg9[%c2, %c0_13] : memref<6x128xf32, #tpu.memory_space<vmem>>, vector<1x128xf32>
    tpu.vector_store %arg9[%c2, %c0_13], %15 {strides = array<i32>} : memref<6x128xf32, #tpu.memory_space<vmem>>, vector<1x128xf32>,
    %17 = vector.extract_strided_slice %8 {offsets = [0, 256], sizes = [1, 128], strides = [1, 1]} : vector<1x512xf32> to vector<1x128xf32>
    %c3 = arith.constant 3 : index
    %c0_14 = arith.constant 0 : index
    %18 = vector.load %arg9[%c3, %c0_14] : memref<6x128xf32, #tpu.memory_space<vmem>>, vector<1x128xf32>
    tpu.vector_store %arg9[%c3, %c0_14], %17 {strides = array<i32>} : memref<6x128xf32, #tpu.memory_space<vmem>>, vector<1x128xf32>,
    %19 = vector.extract_strided_slice %8 {offsets = [0, 384], sizes = [1, 128], strides = [1, 1]} : vector<1x512xf32> to vector<1x128xf32>
    %c4 = arith.constant 4 : index
    %c0_15 = arith.constant 0 : index
    %20 = vector.load %arg9[%c4, %c0_15] : memref<6x128xf32, #tpu.memory_space<vmem>>, vector<1x128xf32>
    tpu.vector_store %arg9[%c4, %c0_15], %19 {strides = array<i32>} : memref<6x128xf32, #tpu.memory_space<vmem>>, vector<1x128xf32>,
    %c0_16 = arith.constant 0 : index
    %c0_17 = arith.constant 0 : index
    %21 = vector.load %arg9[%c0_16, %c0_17] : memref<6x128xf32, #tpu.memory_space<vmem>>, vector<4x128xf32>
    %c1_18 = arith.constant 1 : index
    %c0_19 = arith.constant 0 : index
    %22 = vector.load %arg9[%c1_18, %c0_19] : memref<6x128xf32, #tpu.memory_space<vmem>>, vector<4x128xf32>
    %c2_20 = arith.constant 2 : index
    %c0_21 = arith.constant 0 : index
    %23 = vector.load %arg9[%c2_20, %c0_21] : memref<6x128xf32, #tpu.memory_space<vmem>>, vector<4x128xf32>
    %24 = tpu.concatenate %21, %22, %23 in 1 : vector<4x128xf32>, vector<4x128xf32>, vector<4x128xf32> -> vector<4x384xf32>
    %25 = arith.truncf %24 : vector<4x384xf32> to vector<4x384xbf16>
    %c0_22 = arith.constant 0 : index
    %c0_23 = arith.constant 0 : index
    %26 = vector.load %arg4[%c0_22, %c0_23] : memref<384x256xbf16, #tpu.memory_space<vmem>>, vector<384x256xbf16>
    %cst_24 = arith.constant dense<0.000000e+00> : vector<4x256xf32>
    %27 = tpu.matmul %25, %26, %cst_24 {dimension_numbers = #tpu.dot_dimension_numbers<[1], [0], [0], [1], [0, 0, 1, 1], [], []>} : vector<4x384xbf16>, vector<384x256xbf16>, vector<4x256xf32> -> vector<4x256xf32>
    %c0_25 = arith.constant 0 : index
    %c0_26 = arith.constant 0 : index
    %28 = vector.load %arg5[%c0_25, %c0_26] : memref<1x256xf32, #tpu.memory_space<vmem>>, vector<1x256xf32>
    %29 = vector.broadcast %28 : vector<1x256xf32> to vector<4x256xf32>
    %30 = arith.addf %27, %29 : vector<4x256xf32>
    %cst_27 = arith.constant 0.000000e+00 : f32
    %31 = vector.broadcast %cst_27 : f32 to vector<4x256xf32>
    %32 = arith.maximumf %30, %31 : vector<4x256xf32>
    %cst_28 = arith.constant 0.000000e+00 : f32
    %33 = vector.broadcast %cst_28 : f32 to vector<1x256xf32>
    %c0_29 = arith.constant 0 : index
    %c0_30 = arith.constant 0 : index
    %34 = vector.load %arg10[%c0_29, %c0_30] : memref<6x256xf32, #tpu.memory_space<vmem>>, vector<1x256xf32>
    tpu.vector_store %arg10[%c0_29, %c0_30], %33 {strides = array<i32>} : memref<6x256xf32, #tpu.memory_space<vmem>>, vector<1x256xf32>,
    %cst_31 = arith.constant 0.000000e+00 : f32
    %35 = vector.broadcast %cst_31 : f32 to vector<1x256xf32>
    %c5_32 = arith.constant 5 : index
    %c0_33 = arith.constant 0 : index
    %36 = vector.load %arg10[%c5_32, %c0_33] : memref<6x256xf32, #tpu.memory_space<vmem>>, vector<1x256xf32>
    tpu.vector_store %arg10[%c5_32, %c0_33], %35 {strides = array<i32>} : memref<6x256xf32, #tpu.memory_space<vmem>>, vector<1x256xf32>,
    %c1_34 = arith.constant 1 : index
    %c0_35 = arith.constant 0 : index
    %37 = vector.load %arg10[%c1_34, %c0_35] : memref<6x256xf32, #tpu.memory_space<vmem>>, vector<4x256xf32>
    tpu.vector_store %arg10[%c1_34, %c0_35], %32 {strides = array<i32>} : memref<6x256xf32, #tpu.memory_space<vmem>>, vector<4x256xf32>,
    %c1_36 = arith.constant 1 : index
    %c0_37 = arith.constant 0 : index
    %38 = vector.load %arg10[%c1_36, %c0_37] : memref<6x256xf32, #tpu.memory_space<vmem>>, vector<4x256xf32>
    %c0_38 = arith.constant 0 : index
    %c0_39 = arith.constant 0 : index
    %39 = vector.load %arg10[%c0_38, %c0_39] : memref<6x256xf32, #tpu.memory_space<vmem>>, vector<4x256xf32>
    %c2_40 = arith.constant 2 : index
    %c0_41 = arith.constant 0 : index
    %40 = vector.load %arg10[%c2_40, %c0_41] : memref<6x256xf32, #tpu.memory_space<vmem>>, vector<4x256xf32>
    %41 = tpu.concatenate %38, %39, %40 in 1 : vector<4x256xf32>, vector<4x256xf32>, vector<4x256xf32> -> vector<4x768xf32>
    %42 = arith.truncf %41 : vector<4x768xf32> to vector<4x768xbf16>
    %c0_42 = arith.constant 0 : index
    %c0_43 = arith.constant 0 : index
    %43 = vector.load %arg6[%c0_42, %c0_43] : memref<768x256xbf16, #tpu.memory_space<vmem>>, vector<768x256xbf16>
    %cst_44 = arith.constant dense<0.000000e+00> : vector<4x256xf32>
    %44 = tpu.matmul %42, %43, %cst_44 {dimension_numbers = #tpu.dot_dimension_numbers<[1], [0], [0], [1], [0, 0, 1, 1], [], []>} : vector<4x768xbf16>, vector<768x256xbf16>, vector<4x256xf32> -> vector<4x256xf32>
    %c0_45 = arith.constant 0 : index
    %c0_46 = arith.constant 0 : index
    %45 = vector.load %arg7[%c0_45, %c0_46] : memref<1x256xf32, #tpu.memory_space<vmem>>, vector<1x256xf32>
    %46 = vector.broadcast %45 : vector<1x256xf32> to vector<4x256xf32>
    %47 = arith.addf %44, %46 : vector<4x256xf32>
    %48 = arith.negf %47 : vector<4x256xf32>
    %49 = math.exp %48 : vector<4x256xf32>
    %cst_47 = arith.constant 1.000000e+00 : f32
    %50 = vector.broadcast %cst_47 : f32 to vector<4x256xf32>
    %51 = arith.addf %50, %49 : vector<4x256xf32>
    %52 = arith.divf %50, %51 : vector<4x256xf32>
    %c0_48 = arith.constant 0 : index
    %c0_49 = arith.constant 0 : index
    %c0_50 = arith.constant 0 : index
    %53 = vector.load %arg8[%c0_48, %c0_49, %c0_50] : memref<1x4x256xf32, #tpu.memory_space<vmem>>, vector<1x4x256xf32>
    %54 = vector.shape_cast %53 : vector<1x4x256xf32> to vector<4x256xf32>
    %55 = vector.shape_cast %52 : vector<4x256xf32> to vector<1x4x256xf32>
    tpu.vector_store %arg8[%c0_48, %c0_49, %c0_50], %55 {strides = array<i32>} : memref<1x4x256xf32, #tpu.memory_space<vmem>>, vector<1x4x256xf32>,
    return
  }
  func.func @transform_0(%arg0: i32) -> (i32, i32, i32) {
    %c0_i32 = arith.constant 0 : i32
    %c0_i32_0 = arith.constant 0 : i32
    %c0_i32_1 = arith.constant 0 : i32
    return %arg0, %c0_i32, %c0_i32_0 : i32, i32, i32
  }
  func.func @transform_1(%arg0: i32) -> (i32, i32) {
    %c0_i32 = arith.constant 0 : i32
    %c0_i32_0 = arith.constant 0 : i32
    %c0_i32_1 = arith.constant 0 : i32
    return %c0_i32, %c0_i32_0 : i32, i32
  }
  func.func @transform_2(%arg0: i32) -> (i32, i32) {
    %c0_i32 = arith.constant 0 : i32
    %c0_i32_0 = arith.constant 0 : i32
    %c0_i32_1 = arith.constant 0 : i32
    return %c0_i32, %c0_i32_0 : i32, i32
  }
  func.func @transform_3(%arg0: i32) -> (i32, i32) {
    %c0_i32 = arith.constant 0 : i32
    %c0_i32_0 = arith.constant 0 : i32
    %c0_i32_1 = arith.constant 0 : i32
    return %c0_i32, %c0_i32_0 : i32, i32
  }
  func.func @transform_4(%arg0: i32) -> (i32, i32) {
    %c0_i32 = arith.constant 0 : i32
    %c0_i32_0 = arith.constant 0 : i32
    %c0_i32_1 = arith.constant 0 : i32
    return %c0_i32, %c0_i32_0 : i32, i32
  }
  func.func @transform_5(%arg0: i32) -> (i32, i32) {
    %c0_i32 = arith.constant 0 : i32
    %c0_i32_0 = arith.constant 0 : i32
    %c0_i32_1 = arith.constant 0 : i32
    return %c0_i32, %c0_i32_0 : i32, i32
  }
  func.func @transform_6(%arg0: i32) -> (i32, i32) {
    %c0_i32 = arith.constant 0 : i32
    %c0_i32_0 = arith.constant 0 : i32
    %c0_i32_1 = arith.constant 0 : i32
    return %c0_i32, %c0_i32_0 : i32, i32
  }
  func.func @transform_7(%arg0: i32) -> (i32, i32, i32) {
    %c0_i32 = arith.constant 0 : i32
    %c0_i32_0 = arith.constant 0 : i32
    %c0_i32_1 = arith.constant 0 : i32
    return %arg0, %c0_i32, %c0_i32_0 : i32, i32, i32
  }
}

module attributes {stable_mosaic.version = 11 : i64} {
  func.func @_encoder_kernel(%arg0: i32, %arg1: memref<1x4x256xf32, #tpu.memory_space<vmem>>, %arg2: memref<1x1x8xf32, #tpu.memory_space<vmem>>, %arg3: memref<512x256xbf16, #tpu.memory_space<vmem>>, %arg4: memref<1x256xf32, #tpu.memory_space<vmem>>, %arg5: memref<512x128xbf16, #tpu.memory_space<vmem>>, %arg6: memref<1x128xf32, #tpu.memory_space<vmem>>, %arg7: memref<512x16xbf16, #tpu.memory_space<vmem>>, %arg8: memref<1x16xf32, #tpu.memory_space<vmem>>, %arg9: memref<1x1x24xf32, #tpu.memory_space<vmem>>, %arg10: memref<5x256xf32, #tpu.memory_space<vmem>>, %arg11: memref<5x256xf32, #tpu.memory_space<vmem>>) attributes {dimension_semantics = [#tpu.dimension_semantics<parallel>], iteration_bounds = array<i64: 2>, scalar_prefetch = 0 : i64, scratch_operands = 2 : i64, tpu.core_type = #tpu.core_type<tc>, window_params = [{transform_indices = @transform_0, window_bounds = array<i64: 1, 4, 256>}, {transform_indices = @transform_1, window_bounds = array<i64: 1, 1, 8>}, {pipeline_mode = #tpu.pipeline_mode<synchronous>, transform_indices = @transform_2, window_bounds = array<i64: 512, 256>}, {pipeline_mode = #tpu.pipeline_mode<synchronous>, transform_indices = @transform_3, window_bounds = array<i64: 1, 256>}, {pipeline_mode = #tpu.pipeline_mode<synchronous>, transform_indices = @transform_4, window_bounds = array<i64: 512, 128>}, {pipeline_mode = #tpu.pipeline_mode<synchronous>, transform_indices = @transform_5, window_bounds = array<i64: 1, 128>}, {pipeline_mode = #tpu.pipeline_mode<synchronous>, transform_indices = @transform_6, window_bounds = array<i64: 512, 16>}, {pipeline_mode = #tpu.pipeline_mode<synchronous>, transform_indices = @transform_7, window_bounds = array<i64: 1, 16>}, {transform_indices = @transform_8, window_bounds = array<i64: 1, 1, 24>}]} {
    %cst = arith.constant 0.000000e+00 : f32
    %0 = vector.broadcast %cst : f32 to vector<1x256xf32>
    %c0 = arith.constant 0 : index
    %c0_0 = arith.constant 0 : index
    %1 = vector.load %arg10[%c0, %c0_0] : memref<5x256xf32, #tpu.memory_space<vmem>>, vector<1x256xf32>
    tpu.vector_store %arg10[%c0, %c0_0], %0 {strides = array<i32>} : memref<5x256xf32, #tpu.memory_space<vmem>>, vector<1x256xf32>,
    %c0_1 = arith.constant 0 : index
    %c0_2 = arith.constant 0 : index
    %c0_3 = arith.constant 0 : index
    %2 = vector.load %arg1[%c0_1, %c0_2, %c0_3] : memref<1x4x256xf32, #tpu.memory_space<vmem>>, vector<1x4x256xf32>
    %3 = vector.shape_cast %2 : vector<1x4x256xf32> to vector<4x256xf32>
    %c1 = arith.constant 1 : index
    %c0_4 = arith.constant 0 : index
    %4 = vector.load %arg10[%c1, %c0_4] : memref<5x256xf32, #tpu.memory_space<vmem>>, vector<4x256xf32>
    tpu.vector_store %arg10[%c1, %c0_4], %3 {strides = array<i32>} : memref<5x256xf32, #tpu.memory_space<vmem>>, vector<4x256xf32>,
    %c1_5 = arith.constant 1 : index
    %c0_6 = arith.constant 0 : index
    %5 = vector.load %arg10[%c1_5, %c0_6] : memref<5x256xf32, #tpu.memory_space<vmem>>, vector<4x256xf32>
    %c0_7 = arith.constant 0 : index
    %c0_8 = arith.constant 0 : index
    %6 = vector.load %arg10[%c0_7, %c0_8] : memref<5x256xf32, #tpu.memory_space<vmem>>, vector<4x256xf32>
    %7 = tpu.concatenate %5, %6 in 1 : vector<4x256xf32>, vector<4x256xf32> -> vector<4x512xf32>
    %8 = arith.truncf %7 : vector<4x512xf32> to vector<4x512xbf16>
    %c0_9 = arith.constant 0 : index
    %c0_10 = arith.constant 0 : index
    %9 = vector.load %arg3[%c0_9, %c0_10] : memref<512x256xbf16, #tpu.memory_space<vmem>>, vector<512x256xbf16>
    %cst_11 = arith.constant dense<0.000000e+00> : vector<4x256xf32>
    %10 = tpu.matmul %8, %9, %cst_11 {dimension_numbers = #tpu.dot_dimension_numbers<[1], [0], [0], [1], [0, 0, 1, 1], [], []>} : vector<4x512xbf16>, vector<512x256xbf16>, vector<4x256xf32> -> vector<4x256xf32>
    %c0_12 = arith.constant 0 : index
    %c0_13 = arith.constant 0 : index
    %11 = vector.load %arg4[%c0_12, %c0_13] : memref<1x256xf32, #tpu.memory_space<vmem>>, vector<1x256xf32>
    %12 = vector.broadcast %11 : vector<1x256xf32> to vector<4x256xf32>
    %13 = arith.addf %10, %12 : vector<4x256xf32>
    %cst_14 = arith.constant 0.000000e+00 : f32
    %14 = vector.broadcast %cst_14 : f32 to vector<4x256xf32>
    %15 = arith.maximumf %13, %14 : vector<4x256xf32>
    %cst_15 = arith.constant 0.000000e+00 : f32
    %16 = vector.broadcast %cst_15 : f32 to vector<1x256xf32>
    %c0_16 = arith.constant 0 : index
    %c0_17 = arith.constant 0 : index
    %17 = vector.load %arg11[%c0_16, %c0_17] : memref<5x256xf32, #tpu.memory_space<vmem>>, vector<1x256xf32>
    tpu.vector_store %arg11[%c0_16, %c0_17], %16 {strides = array<i32>} : memref<5x256xf32, #tpu.memory_space<vmem>>, vector<1x256xf32>,
    %c1_18 = arith.constant 1 : index
    %c0_19 = arith.constant 0 : index
    %18 = vector.load %arg11[%c1_18, %c0_19] : memref<5x256xf32, #tpu.memory_space<vmem>>, vector<4x256xf32>
    tpu.vector_store %arg11[%c1_18, %c0_19], %15 {strides = array<i32>} : memref<5x256xf32, #tpu.memory_space<vmem>>, vector<4x256xf32>,
    %c1_20 = arith.constant 1 : index
    %c0_21 = arith.constant 0 : index
    %19 = vector.load %arg11[%c1_20, %c0_21] : memref<5x256xf32, #tpu.memory_space<vmem>>, vector<4x256xf32>
    %c0_22 = arith.constant 0 : index
    %c0_23 = arith.constant 0 : index
    %20 = vector.load %arg11[%c0_22, %c0_23] : memref<5x256xf32, #tpu.memory_space<vmem>>, vector<4x256xf32>
    %21 = tpu.concatenate %19, %20 in 1 : vector<4x256xf32>, vector<4x256xf32> -> vector<4x512xf32>
    %22 = arith.truncf %21 : vector<4x512xf32> to vector<4x512xbf16>
    %c0_24 = arith.constant 0 : index
    %c0_25 = arith.constant 0 : index
    %23 = vector.load %arg5[%c0_24, %c0_25] : memref<512x128xbf16, #tpu.memory_space<vmem>>, vector<512x128xbf16>
    %cst_26 = arith.constant dense<0.000000e+00> : vector<4x128xf32>
    %24 = tpu.matmul %22, %23, %cst_26 {dimension_numbers = #tpu.dot_dimension_numbers<[1], [0], [0], [1], [0, 0, 1, 1], [], []>} : vector<4x512xbf16>, vector<512x128xbf16>, vector<4x128xf32> -> vector<4x128xf32>
    %c0_27 = arith.constant 0 : index
    %c0_28 = arith.constant 0 : index
    %25 = vector.load %arg6[%c0_27, %c0_28] : memref<1x128xf32, #tpu.memory_space<vmem>>, vector<1x128xf32>
    %26 = vector.broadcast %25 : vector<1x128xf32> to vector<4x128xf32>
    %27 = arith.addf %24, %26 : vector<4x128xf32>
    %cst_29 = arith.constant 0.000000e+00 : f32
    %28 = vector.broadcast %cst_29 : f32 to vector<4x128xf32>
    %29 = arith.maximumf %27, %28 : vector<4x128xf32>
    %c0_30 = arith.constant 0 : index
    %c0_31 = arith.constant 0 : index
    %30 = vector.load %arg8[%c0_30, %c0_31] : memref<1x16xf32, #tpu.memory_space<vmem>>, vector<1x16xf32>
    %31 = vector.extract_strided_slice %29 {offsets = [0, 0], sizes = [1, 128], strides = [1, 1]} : vector<4x128xf32> to vector<1x128xf32>
    %32 = arith.truncf %31 : vector<1x128xf32> to vector<1x128xbf16>
    %c0_32 = arith.constant 0 : index
    %c0_33 = arith.constant 0 : index
    %33 = vector.load %arg7[%c0_32, %c0_33] : memref<512x16xbf16, #tpu.memory_space<vmem>>, vector<128x16xbf16>
    %cst_34 = arith.constant dense<0.000000e+00> : vector<1x16xf32>
    %34 = tpu.matmul %32, %33, %cst_34 {dimension_numbers = #tpu.dot_dimension_numbers<[1], [0], [0], [1], [0, 0, 1, 1], [], []>} : vector<1x128xbf16>, vector<128x16xbf16>, vector<1x16xf32> -> vector<1x16xf32>
    %35 = arith.addf %30, %34 : vector<1x16xf32>
    %36 = vector.extract_strided_slice %29 {offsets = [1, 0], sizes = [1, 128], strides = [1, 1]} : vector<4x128xf32> to vector<1x128xf32>
    %37 = arith.truncf %36 : vector<1x128xf32> to vector<1x128xbf16>
    %c128 = arith.constant 128 : index
    %c0_35 = arith.constant 0 : index
    %38 = vector.load %arg7[%c128, %c0_35] : memref<512x16xbf16, #tpu.memory_space<vmem>>, vector<128x16xbf16>
    %cst_36 = arith.constant dense<0.000000e+00> : vector<1x16xf32>
    %39 = tpu.matmul %37, %38, %cst_36 {dimension_numbers = #tpu.dot_dimension_numbers<[1], [0], [0], [1], [0, 0, 1, 1], [], []>} : vector<1x128xbf16>, vector<128x16xbf16>, vector<1x16xf32> -> vector<1x16xf32>
    %40 = arith.addf %35, %39 : vector<1x16xf32>
    %41 = vector.extract_strided_slice %29 {offsets = [2, 0], sizes = [1, 128], strides = [1, 1]} : vector<4x128xf32> to vector<1x128xf32>
    %42 = arith.truncf %41 : vector<1x128xf32> to vector<1x128xbf16>
    %c256 = arith.constant 256 : index
    %c0_37 = arith.constant 0 : index
    %43 = vector.load %arg7[%c256, %c0_37] : memref<512x16xbf16, #tpu.memory_space<vmem>>, vector<128x16xbf16>
    %cst_38 = arith.constant dense<0.000000e+00> : vector<1x16xf32>
    %44 = tpu.matmul %42, %43, %cst_38 {dimension_numbers = #tpu.dot_dimension_numbers<[1], [0], [0], [1], [0, 0, 1, 1], [], []>} : vector<1x128xbf16>, vector<128x16xbf16>, vector<1x16xf32> -> vector<1x16xf32>
    %45 = arith.addf %40, %44 : vector<1x16xf32>
    %46 = vector.extract_strided_slice %29 {offsets = [3, 0], sizes = [1, 128], strides = [1, 1]} : vector<4x128xf32> to vector<1x128xf32>
    %47 = arith.truncf %46 : vector<1x128xf32> to vector<1x128xbf16>
    %c384 = arith.constant 384 : index
    %c0_39 = arith.constant 0 : index
    %48 = vector.load %arg7[%c384, %c0_39] : memref<512x16xbf16, #tpu.memory_space<vmem>>, vector<128x16xbf16>
    %cst_40 = arith.constant dense<0.000000e+00> : vector<1x16xf32>
    %49 = tpu.matmul %47, %48, %cst_40 {dimension_numbers = #tpu.dot_dimension_numbers<[1], [0], [0], [1], [0, 0, 1, 1], [], []>} : vector<1x128xbf16>, vector<128x16xbf16>, vector<1x16xf32> -> vector<1x16xf32>
    %50 = arith.addf %45, %49 : vector<1x16xf32>
    %51 = vector.extract_strided_slice %50 {offsets = [0, 0], sizes = [1, 8], strides = [1, 1]} : vector<1x16xf32> to vector<1x8xf32>
    %52 = vector.extract_strided_slice %50 {offsets = [0, 8], sizes = [1, 8], strides = [1, 1]} : vector<1x16xf32> to vector<1x8xf32>
    %c0_41 = arith.constant 0 : index
    %c0_42 = arith.constant 0 : index
    %c0_43 = arith.constant 0 : index
    %53 = vector.load %arg2[%c0_41, %c0_42, %c0_43] : memref<1x1x8xf32, #tpu.memory_space<vmem>>, vector<1x1x8xf32>
    %54 = vector.shape_cast %53 : vector<1x1x8xf32> to vector<1x8xf32>
    %cst_44 = arith.constant 5.000000e-01 : f32
    %55 = vector.broadcast %cst_44 : f32 to vector<1x8xf32>
    %56 = arith.mulf %55, %52 : vector<1x8xf32>
    %57 = math.exp %56 : vector<1x8xf32>
    %58 = arith.mulf %54, %57 : vector<1x8xf32>
    %59 = arith.addf %51, %58 : vector<1x8xf32>
    %60 = tpu.concatenate %51, %52, %59 in 1 : vector<1x8xf32>, vector<1x8xf32>, vector<1x8xf32> -> vector<1x24xf32>
    %c0_45 = arith.constant 0 : index
    %c0_46 = arith.constant 0 : index
    %c0_47 = arith.constant 0 : index
    %61 = vector.load %arg9[%c0_45, %c0_46, %c0_47] : memref<1x1x24xf32, #tpu.memory_space<vmem>>, vector<1x1x24xf32>
    %62 = vector.shape_cast %61 : vector<1x1x24xf32> to vector<1x24xf32>
    %63 = vector.shape_cast %60 : vector<1x24xf32> to vector<1x1x24xf32>
    tpu.vector_store %arg9[%c0_45, %c0_46, %c0_47], %63 {strides = array<i32>} : memref<1x1x24xf32, #tpu.memory_space<vmem>>, vector<1x1x24xf32>,
    return
  }
  func.func @transform_0(%arg0: i32) -> (i32, i32, i32) {
    %c0_i32 = arith.constant 0 : i32
    %c0_i32_0 = arith.constant 0 : i32
    %c0_i32_1 = arith.constant 0 : i32
    return %arg0, %c0_i32, %c0_i32_0 : i32, i32, i32
  }
  func.func @transform_1(%arg0: i32) -> (i32, i32, i32) {
    %c0_i32 = arith.constant 0 : i32
    %c0_i32_0 = arith.constant 0 : i32
    %c0_i32_1 = arith.constant 0 : i32
    return %arg0, %c0_i32, %c0_i32_0 : i32, i32, i32
  }
  func.func @transform_2(%arg0: i32) -> (i32, i32) {
    %c0_i32 = arith.constant 0 : i32
    %c0_i32_0 = arith.constant 0 : i32
    %c0_i32_1 = arith.constant 0 : i32
    return %c0_i32, %c0_i32_0 : i32, i32
  }
  func.func @transform_3(%arg0: i32) -> (i32, i32) {
    %c0_i32 = arith.constant 0 : i32
    %c0_i32_0 = arith.constant 0 : i32
    %c0_i32_1 = arith.constant 0 : i32
    return %c0_i32, %c0_i32_0 : i32, i32
  }
  func.func @transform_4(%arg0: i32) -> (i32, i32) {
    %c0_i32 = arith.constant 0 : i32
    %c0_i32_0 = arith.constant 0 : i32
    %c0_i32_1 = arith.constant 0 : i32
    return %c0_i32, %c0_i32_0 : i32, i32
  }
  func.func @transform_5(%arg0: i32) -> (i32, i32) {
    %c0_i32 = arith.constant 0 : i32
    %c0_i32_0 = arith.constant 0 : i32
    %c0_i32_1 = arith.constant 0 : i32
    return %c0_i32, %c0_i32_0 : i32, i32
  }
  func.func @transform_6(%arg0: i32) -> (i32, i32) {
    %c0_i32 = arith.constant 0 : i32
    %c0_i32_0 = arith.constant 0 : i32
    %c0_i32_1 = arith.constant 0 : i32
    return %c0_i32, %c0_i32_0 : i32, i32
  }
  func.func @transform_7(%arg0: i32) -> (i32, i32) {
    %c0_i32 = arith.constant 0 : i32
    %c0_i32_0 = arith.constant 0 : i32
    %c0_i32_1 = arith.constant 0 : i32
    return %c0_i32, %c0_i32_0 : i32, i32
  }
  func.func @transform_8(%arg0: i32) -> (i32, i32, i32) {
    %c0_i32 = arith.constant 0 : i32
    %c0_i32_0 = arith.constant 0 : i32
    %c0_i32_1 = arith.constant 0 : i32
    return %arg0, %c0_i32, %c0_i32_0 : i32, i32, i32
  }
}

</mosaic_0001>

<bundles_post_ra>
// kernel: forward.2
= control target key start
LH: loop header
LB: loop body
LE: loop exit
PB: predicated region body
PF: predicated region fallthrough
CT: control target
= control target key end

     0   :  { %13 = vsyncpa [#allocation5], 0  ;;  %s2443_s27 = smov 0   ;;  %s2967_s0 = inlined_call_operand.vmem [shape: f32[2,4,256], index: 0, kind: input, shape index: {}]   ;;  %s2968_s1 = inlined_call_operand.vmem [shape: f32[2,1,8], index: 1, kind: input, shape index: {}]   ;;  %s2969_s2 = inlined_call_operand.vmem [shape: bf16[512,256], index: 2, kind: input, shape index: {}]   ;;  %s2970_s3 = inlined_call_operand.vmem [shape: f32[1,256], index: 3, kind: input, shape index: {}]   ;;  %s2971_s4 = inlined_call_operand.vmem [shape: bf16[512,128], index: 4, kind: input, shape index: {}]   ;;  %s2972_s5 = inlined_call_operand.vmem [shape: f32[1,128], index: 5, kind: input, shape index: {}]   ;;  %s2973_s6 = inlined_call_operand.hbm [shape: bf16[512,16], index: 6, kind: input, shape index: {}]   ;;  %s2974_s7 = inlined_call_operand.vmem [shape: f32[1,16], index: 7, kind: input, shape index: {}]   ;;  %s2975_s8 = inlined_call_operand.vmem [shape: f32[2,1,24], index: 8, kind: output, shape index: {}]  }
   0x1 LB: > { %s251_s30 = sshll.u32 %s2973_s6, 4  ;;  %s2452_s9 = sadd.s32 4294967295, %s2390_s27   ;;  %s2390_s27 = sphi %s2443_s27, %s19_s27   ;;  %s252_s30 = int_to_ptr.hbm [resolvable:$true] %s251_s30 }
   0x2   : > { %p1673_p0 = scmp.ge.s32.totalorder %s2390_s27, 1  ;;  %p228_p1 = scmp.lt.s32.totalorder %s2390_s27, 3 }
   0x3   : > { %p2331_p2 = scmp.eq.s32.totalorder %s2452_s9, 0  ;;  %s2392_s10 = smov [#allocation4]  }
   0x4   : > { %p229_p3 = pnand %p1673_p0, %p228_p1  ;;  %s253_s11 = sshll.u32 %s2392_s10, 4  ;;  %s254_s11 = int_to_ptr.vmem [resolvable:$true] %s253_s11 }
   0x5   : > { %s2393_s12 = smov 64   ;;  %s2394_s13 = smov 4  }
   0x6   : > { %p2327_p4 = pneg %p229_p3  ;;  %286 = sbr.rel (%p229_p3) target bundleno = 767 (0x2ff), region = 52 }
   0x8   : > { %p2328_p5 = pnand %p2331_p2, %p2327_p4 }
   0xa   : > { %2330 = dma.hbm_to_vmem [thread:$0]  (!%p2328_p5), %s252_s30, 4096, %s254_s11, [#allocation5], %s2393_s12, %s2393_s12, %s2394_s13  }
   0xb   : > { %2385 = dma.done.wait (%p2331_p2), [#allocation5], 4096  }
   0xc   : > { %2387 = vsyncadd (%p2331_p2), [#allocation5], 4294963200  ;;  %v333_v0 = vlaneseq  ;;  %v2395_v1 = vmov 0.0   ;;  %v1738_v2 = vld [vmem:[%s2969_s2 + $0x70] sm:$0xf]  ;;  %p322_p6 = scmp.lt.s32.totalorder %s2452_s9, 1 }
   0xd   : > { %v2210_v3 = vld [vmem:[%s2969_s2 + $0x74] sm:$0xf0]  ;;  %v1802_v4 = vld [vmem:[%s2969_s2 + $0xf0] sm:$0xf]  ;;  %v1730_v13 = vld [vmem:[%s2969_s2 + $0x60] sm:$0xf] }
   0xe   : > { %vm335_vm0 = vcmp.lt.s32.totalorder %v333_v0, 256  ;;  %v1739_v5 = vor.u32 %v2210_v3, %v1738_v2  ;;  %v2226_v6 = vld [vmem:[%s2969_s2 + $0xf4] sm:$0xf0]  ;;  %v1866_v7 = vld [vmem:[%s2969_s2 + $0x170] sm:$0xf]  ;;  %s2977_s9 = smov (!%p322_p6, %s2452_s9), 1 }
   0xf   : > { %337 = vst.msk [vmem:[#allocation2] ss:$8 sm:$0x3] %vm335_vm0, %v2395_v1  ;;  %v2242_v8 = vld [vmem:[%s2969_s2 + $0x174] sm:$0xf0]  ;;  %v1803_v9 = vor.u32 %v2226_v6, %v1802_v4  ;;  %s2194_s10 = sshll.u32 %s2977_s9, 3  ;;  %s329_s28 = scalar_lea.vmem %s2968_s1, %s2977_s9 }
  0x10   : > { %892 = vst.msk [vmem:[#allocation3] ss:$8 sm:$0x3] %vm335_vm0, %v2395_v1  ;;  %v1867_v10 = vor.u32 %v2242_v8, %v1866_v7  ;;  %v1930_v11 = vld [vmem:[%s2969_s2 + $0x1f0] sm:$0xf]  ;;  %786 = vmatpush.bf16.msra.mxu0 %v1739_v5  ;;  %s326_s18 = scalar_lea.vmem %s2967_s0, %s2194_s10  ;;  %s2396_s25 = smov 120  }
  0x11   : > { %v2258_v12 = vld [vmem:[%s2969_s2 + $0x1f4] sm:$0xf0]  ;;  %v2208_v15 = vld [vmem:[%s2969_s2 + $0x64] sm:$0xf0]  ;;  %v1794_v16 = vld [vmem:[%s2969_s2 + $0xe0] sm:$0xf]  ;;  %799 = vmatpush.bf16.msra.mxu1 %v1803_v9  ;;  %s332_s12 = scalar_lea.vmem %s2975_s8, %s2977_s9 }
  0x12   : > { %v1931_v14 = vor.u32 %v2258_v12, %v1930_v11  ;;  %v2224_v17 = vld [vmem:[%s2969_s2 + $0xe4] sm:$0xf0]  ;;  %812 = vmatpush.bf16.msra.mxu2 %v1867_v10  ;;  %v1731_v18 = vor.u32 %v2208_v15, %v1730_v13  ;;  %v1858_v20 = vld [vmem:[%s2969_s2 + $0x160] sm:$0xf]  ;;  %v1722_v25 = vld [vmem:[%s2969_s2 + $0x50] sm:$0xf] }
  0x13   : > { %v1795_v19 = vor.u32 %v2224_v17, %v1794_v16  ;;  %v2240_v21 = vld [vmem:[%s2969_s2 + $0x164] sm:$0xf0]  ;;  %v1922_v22 = vld [vmem:[%s2969_s2 + $0x1e0] sm:$0xf]  ;;  %v2206_v26 = vld [vmem:[%s2969_s2 + $0x54] sm:$0xf0] }
  0x14   : > { %825 = vmatpush.bf16.msra.mxu3 %v1931_v14  ;;  %v1859_v23 = vor.u32 %v2240_v21, %v1858_v20  ;;  %v2256_v24 = vld [vmem:[%s2969_s2 + $0x1e4] sm:$0xf0]  ;;  %v1786_v28 = vld [vmem:[%s2969_s2 + $0xd0] sm:$0xf]  ;;  %v2222_v29 = vld [vmem:[%s2969_s2 + $0xd4] sm:$0xf0]  ;;  %787 = vmatpush.bf16.msra.mxu0 %v1731_v18  ;;  %v1723_v31 = vor.u32 %v2206_v26, %v1722_v25 }
  0x15   : > { %v1923_v27 = vor.u32 %v2256_v24, %v1922_v22  ;;  %v1850_v30 = vld [vmem:[%s2969_s2 + $0x150] sm:$0xf]  ;;  %v2238_v32 = vld [vmem:[%s2969_s2 + $0x154] sm:$0xf0]  ;;  %800 = vmatpush.bf16.msra.mxu1 %v1795_v19  ;;  %v1787_v35 = vor.u32 %v2222_v29, %v1786_v28  ;;  %v1714_v37 = vld [vmem:[%s2969_s2 + $0x40] sm:$0xf] }
  0x16   : > { %v1914_v33 = vld [vmem:[%s2969_s2 + $0x1d0] sm:$0xf]  ;;  %v2254_v34 = vld [vmem:[%s2969_s2 + $0x1d4] sm:$0xf0]  ;;  %813 = vmatpush.bf16.msra.mxu2 %v1859_v23  ;;  %v1851_v36 = vor.u32 %v2238_v32, %v1850_v30  ;;  %v2204_v38 = vld [vmem:[%s2969_s2 + $0x44] sm:$0xf0] }
  0x17   : > { %v1778_v39 = vld [vmem:[%s2969_s2 + $0xc0] sm:$0xf]  ;;  %v1915_v40 = vor.u32 %v2254_v34, %v1914_v33  ;;  %v2220_v41 = vld [vmem:[%s2969_s2 + $0xc4] sm:$0xf0]  ;;  %v1715_v46 = vor.u32 %v2204_v38, %v1714_v37  ;;  %v1706_v49 = vld [vmem:[%s2969_s2 + $0x30] sm:$0xf] }
  0x18   : > { %826 = vmatpush.bf16.msra.mxu3 %v1923_v27  ;;  %v1842_v42 = vld [vmem:[%s2969_s2 + $0x140] sm:$0xf]  ;;  %v2236_v43 = vld [vmem:[%s2969_s2 + $0x144] sm:$0xf0]  ;;  %788 = vmatpush.bf16.msra.mxu0 %v1723_v31  ;;  %v1779_v47 = vor.u32 %v2220_v41, %v1778_v39  ;;  %v2202_v50 = vld [vmem:[%s2969_s2 + $0x34] sm:$0xf0] }
  0x19   : > { %v1906_v44 = vld [vmem:[%s2969_s2 + $0x1c0] sm:$0xf]  ;;  %v2252_v45 = vld [vmem:[%s2969_s2 + $0x1c4] sm:$0xf0]  ;;  %801 = vmatpush.bf16.msra.mxu1 %v1787_v35  ;;  %v1843_v48 = vor.u32 %v2236_v43, %v1842_v42  ;;  %v1770_v51 = vld [vmem:[%s2969_s2 + $0xb0] sm:$0xf]  ;;  %v1707_v58 = vor.u32 %v2202_v50, %v1706_v49 }
  0x1a   : > { %814 = vmatpush.bf16.msra.mxu2 %v1851_v36  ;;  %v1907_v52 = vor.u32 %v2252_v45, %v1906_v44  ;;  %v2218_v53 = vld [vmem:[%s2969_s2 + $0xb4] sm:$0xf0]  ;;  %v1834_v54 = vld [vmem:[%s2969_s2 + $0x130] sm:$0xf]  ;;  %v1698_v61 = vld [vmem:[%s2969_s2 + $0x20] sm:$0xf] }
  0x1b   : > { %v2234_v55 = vld [vmem:[%s2969_s2 + $0x134] sm:$0xf0]  ;;  %v1898_v56 = vld [vmem:[%s2969_s2 + $0x1b0] sm:$0xf]  ;;  %v1771_v59 = vor.u32 %v2218_v53, %v1770_v51  ;;  %v2200_v62 = vld [vmem:[%s2969_s2 + $0x24] sm:$0xf0] }
  0x1c   : > { %827 = vmatpush.bf16.msra.mxu3 %v1915_v40  ;;  %v2250_v57 = vld [vmem:[%s2969_s2 + $0x1b4] sm:$0xf0]  ;;  %789 = vmatpush.bf16.msra.mxu0 %v1715_v46  ;;  %v1835_v60 = vor.u32 %v2234_v55, %v1834_v54  ;;  %v1762_v63 = vld [vmem:[%s2969_s2 + $0xa0] sm:$0xf]  ;;  %v2216_v1 = vld [vmem:[%s2969_s2 + $0xa4] sm:$0xf0]  ;;  %v1699_v6 = vor.u32 %v2200_v62, %v1698_v61 }
  0x1d   : > { %802 = vmatpush.bf16.msra.mxu1 %v1779_v47  ;;  %v1899_v0 = vor.u32 %v2250_v57, %v1898_v56  ;;  %v1826_v2 = vld [vmem:[%s2969_s2 + $0x120] sm:$0xf]  ;;  %v2232_v3 = vld [vmem:[%s2969_s2 + $0x124] sm:$0xf0]  ;;  %v1763_v7 = vor.u32 %v2216_v1, %v1762_v63  ;;  %v1690_v9 = vld [vmem:[%s2969_s2 + $0x10] sm:$0xf] }
  0x1e   : > { %815 = vmatpush.bf16.msra.mxu2 %v1843_v48  ;;  %v1890_v4 = vld [vmem:[%s2969_s2 + $0x1a0] sm:$0xf]  ;;  %v2248_v5 = vld [vmem:[%s2969_s2 + $0x1a4] sm:$0xf0]  ;;  %v1827_v8 = vor.u32 %v2232_v3, %v1826_v2  ;;  %v2198_v10 = vld [vmem:[%s2969_s2 + $0x14] sm:$0xf0] }
  0x1f   : > { %v1754_v11 = vld [vmem:[%s2969_s2 + $0x90] sm:$0xf]  ;;  %v1891_v12 = vor.u32 %v2248_v5, %v1890_v4  ;;  %v2214_v13 = vld [vmem:[%s2969_s2 + $0x94] sm:$0xf0]  ;;  %v1682_v18 = vld [vmem:[%s2969_s2] sm:$0xf]  ;;  %v1691_v19 = vor.u32 %v2198_v10, %v1690_v9 }
  0x20   : > { %828 = vmatpush.bf16.msra.mxu3 %v1907_v52  ;;  %790 = vmatpush.bf16.msra.mxu0 %v1707_v58  ;;  %v1818_v14 = vld [vmem:[%s2969_s2 + $0x110] sm:$0xf]  ;;  %v2230_v15 = vld [vmem:[%s2969_s2 + $0x114] sm:$0xf0]  ;;  %v2196_v20 = vld [vmem:[%s2969_s2 + $0x4] sm:$0xf0]  ;;  %v1755_v23 = vor.u32 %v2214_v13, %v1754_v11 }
  0x21   : > { %803 = vmatpush.bf16.msra.mxu1 %v1771_v59  ;;  %v1882_v16 = vld [vmem:[%s2969_s2 + $0x190] sm:$0xf]  ;;  %v2246_v17 = vld [vmem:[%s2969_s2 + $0x194] sm:$0xf0]  ;;  %v1746_v21 = vld [vmem:[%s2969_s2 + $0x80] sm:$0xf]  ;;  %v1819_v24 = vor.u32 %v2230_v15, %v1818_v14  ;;  %v1683_v35 = vor.u32 %v2196_v20, %v1682_v18 }
  0x22   : > { %816 = vmatpush.bf16.msra.mxu2 %v1835_v60  ;;  %v2212_v22 = vld [vmem:[%s2969_s2 + $0x84] sm:$0xf0]  ;;  %v1810_v25 = vld [vmem:[%s2969_s2 + $0x100] sm:$0xf]  ;;  %v1883_v28 = vor.u32 %v2246_v17, %v1882_v16  ;;  %v2209_v30 = vld [vmem:[%s2969_s2 + $0x74] sm:$0xf] }
  0x23   : > { %v2228_v26 = vld [vmem:[%s2969_s2 + $0x104] sm:$0xf0]  ;;  %v1874_v27 = vld [vmem:[%s2969_s2 + $0x180] sm:$0xf]  ;;  %v1740_v31 = vld [vmem:[%s2969_s2 + $0x78] sm:$0xf0]  ;;  %v1747_v38 = vor.u32 %v2212_v22, %v1746_v21 }
  0x24   : > { %829 = vmatpush.bf16.msra.mxu3 %v1899_v0  ;;  %791 = vmatpush.bf16.msra.mxu0 %v1699_v6  ;;  %v2244_v29 = vld [vmem:[%s2969_s2 + $0x184] sm:$0xf0]  ;;  %v2225_v32 = vld [vmem:[%s2969_s2 + $0xf4] sm:$0xf]  ;;  %v1804_v33 = vld [vmem:[%s2969_s2 + $0xf8] sm:$0xf0]  ;;  %v1811_v39 = vor.u32 %v2228_v26, %v1810_v25  ;;  %v1743_v43 = vor.u32 %v2209_v30, %v1740_v31 }
  0x25   : > { %804 = vmatpush.bf16.msra.mxu1 %v1763_v7  ;;  %v339_v34 = vld [vmem:[%s326_s18] sm:$0xff]  ;;  %v2241_v36 = vld [vmem:[%s2969_s2 + $0x174] sm:$0xf]  ;;  %v1868_v37 = vld [vmem:[%s2969_s2 + $0x178] sm:$0xf0]  ;;  %v1875_v42 = vor.u32 %v2244_v29, %v1874_v27  ;;  %v1807_v44 = vor.u32 %v2225_v32, %v1804_v33  ;;  %s2397_s29 = smov 16  }
  0x26   : > { %817 = vmatpush.bf16.msra.mxu2 %v1827_v8  ;;  %341 = vst [vmem:[#allocation1] ss:$2 sm:$0xff] %v339_v34  ;;  %v2257_v40 = vld [vmem:[%s2969_s2 + $0x1f4] sm:$0xf]  ;;  %v1932_v41 = vld [vmem:[%s2969_s2 + $0x1f8] sm:$0xf0]  ;;  %v1871_v45 = vor.u32 %v2241_v36, %v1868_v37 }
  0x27   : > { %v2207_v46 = vld [vmem:[%s2969_s2 + $0x64] sm:$0xf]  ;;  %v1732_v47 = vld [vmem:[%s2969_s2 + $0x68] sm:$0xf0]  ;;  %v1935_v49 = vor.u32 %v2257_v40, %v1932_v41  ;;  %v2205_v55 = vld [vmem:[%s2969_s2 + $0x54] sm:$0xf] }
  0x28   : > { %830 = vmatpush.bf16.msra.mxu3 %v1891_v12  ;;  %792 = vmatpush.bf16.msra.mxu0 %v1691_v19  ;;  %v2223_v48 = vld [vmem:[%s2969_s2 + $0xe4] sm:$0xf]  ;;  %v1796_v50 = vld [vmem:[%s2969_s2 + $0xe8] sm:$0xf0]  ;;  %v1735_v56 = vor.u32 %v2207_v46, %v1732_v47  ;;  %v1724_v57 = vld [vmem:[%s2969_s2 + $0x58] sm:$0xf0] }
  0x29   : > { %805 = vmatpush.bf16.msra.mxu1 %v1755_v23  ;;  %v2239_v51 = vld [vmem:[%s2969_s2 + $0x164] sm:$0xf]  ;;  %v1860_v52 = vld [vmem:[%s2969_s2 + $0x168] sm:$0xf0]  ;;  %v2221_v58 = vld [vmem:[%s2969_s2 + $0xd4] sm:$0xf]  ;;  %v1799_v60 = vor.u32 %v2223_v48, %v1796_v50  ;;  %v1727_v7 = vor.u32 %v2205_v55, %v1724_v57 }
  0x2a   : > { %818 = vmatpush.bf16.msra.mxu2 %v1819_v24  ;;  %v2255_v53 = vld [vmem:[%s2969_s2 + $0x1e4] sm:$0xf]  ;;  %v1924_v54 = vld [vmem:[%s2969_s2 + $0x1e8] sm:$0xf0]  ;;  %v1788_v59 = vld [vmem:[%s2969_s2 + $0xd8] sm:$0xf0]  ;;  %v1863_v61 = vor.u32 %v2239_v51, %v1860_v52 }
  0x2b   : > { %v1927_v0 = vor.u32 %v2255_v53, %v1924_v54  ;;  %v2237_v3 = vld [vmem:[%s2969_s2 + $0x154] sm:$0xf]  ;;  %v1852_v4 = vld [vmem:[%s2969_s2 + $0x158] sm:$0xf0]  ;;  %v2203_v8 = vld [vmem:[%s2969_s2 + $0x44] sm:$0xf]  ;;  %v1791_v9 = vor.u32 %v2221_v58, %v1788_v59 }
  0x2c   : > { %831 = vmatpush.bf16.msra.mxu3 %v1883_v28  ;;  %793 = vmatpush.bf16.msra.mxu0 %v1683_v35  ;;  %v2253_v5 = vld [vmem:[%s2969_s2 + $0x1d4] sm:$0xf]  ;;  %v1916_v6 = vld [vmem:[%s2969_s2 + $0x1d8] sm:$0xf0]  ;;  %v1855_v10 = vor.u32 %v2237_v3, %v1852_v4  ;;  %v1716_v11 = vld [vmem:[%s2969_s2 + $0x48] sm:$0xf0] }
  0x2d   : > { %806 = vmatpush.bf16.msra.mxu1 %v1747_v38  ;;  %v342_v62 = vld.sshfl [vmem:[#allocation1] sm:$0xff pattern:$0x75316420]  ;;  %v343_v63 = vld.sshfl [vmem:[#allocation1 + $0x8] sm:$0xff pattern:$0x75316420]  ;;  %v1919_v13 = vor.u32 %v2253_v5, %v1916_v6  ;;  %v1719_v19 = vor.u32 %v2203_v8, %v1716_v11 }
  0x2e   : > { %819 = vmatpush.bf16.msra.mxu2 %v1811_v39  ;;  %v344_v1 = vrot.slane %v342_v62, 7  ;;  %v345_v2 = vrot.slane %v343_v63, 7  ;;  %v2219_v12 = vld [vmem:[%s2969_s2 + $0xc4] sm:$0xf]  ;;  %v1780_v14 = vld [vmem:[%s2969_s2 + $0xc8] sm:$0xf0] }
  0x2f   : > { %v2235_v15 = vld [vmem:[%s2969_s2 + $0x144] sm:$0xf]  ;;  %v1844_v16 = vld [vmem:[%s2969_s2 + $0x148] sm:$0xf0]  ;;  %v2201_v20 = vld [vmem:[%s2969_s2 + $0x34] sm:$0xf]  ;;  %v1783_v21 = vor.u32 %v2219_v12, %v1780_v14 }
  0x30   : > { %832 = vmatpush.bf16.msra.mxu3 %v1875_v42  ;;  %838 = vmatpush.bf16.msrb.mxu0 %v1743_v43  ;;  %348 = vst [vmem:[#allocation2] sm:$0x1e] %v344_v1  ;;  %v2251_v17 = vld [vmem:[%s2969_s2 + $0x1c4] sm:$0xf]  ;;  %v1908_v18 = vld [vmem:[%s2969_s2 + $0x1c8] sm:$0xf0]  ;;  %v1847_v22 = vor.u32 %v2235_v15, %v1844_v16 }
  0x31   : > { %851 = vmatpush.bf16.msrb.mxu1 %v1807_v44  ;;  %349 = vst [vmem:[#allocation2 + $0x8] sm:$0x1e] %v345_v2  ;;  %v1708_v23 = vld [vmem:[%s2969_s2 + $0x38] sm:$0xf0]  ;;  %v2217_v24 = vld [vmem:[%s2969_s2 + $0xb4] sm:$0xf]  ;;  %v1911_v26 = vor.u32 %v2251_v17, %v1908_v18 }
  0x32   : > { %864 = vmatpush.bf16.msrb.mxu2 %v1871_v45  ;;  %v1772_v25 = vld [vmem:[%s2969_s2 + $0xb8] sm:$0xf0]  ;;  %v2233_v27 = vld [vmem:[%s2969_s2 + $0x134] sm:$0xf]  ;;  %v1711_v37 = vor.u32 %v2201_v20, %v1708_v23  ;;  %v2199_v38 = vld [vmem:[%s2969_s2 + $0x24] sm:$0xf] }
  0x33   : > { %v1836_v28 = vld [vmem:[%s2969_s2 + $0x138] sm:$0xf0]  ;;  %v2249_v29 = vld [vmem:[%s2969_s2 + $0x1b4] sm:$0xf]  ;;  %v1775_v41 = vor.u32 %v2217_v24, %v1772_v25  ;;  %v1700_v43 = vld [vmem:[%s2969_s2 + $0x28] sm:$0xf0] }
  0x34   : > { %877 = vmatpush.bf16.msrb.mxu3 %v1935_v49  ;;  %839 = vmatpush.bf16.msrb.mxu0 %v1735_v56  ;;  %v1900_v32 = vld [vmem:[%s2969_s2 + $0x1b8] sm:$0xf0]  ;;  %v1839_v42 = vor.u32 %v2233_v27, %v1836_v28  ;;  %v2215_v44 = vld [vmem:[%s2969_s2 + $0xa4] sm:$0xf]  ;;  %v1764_v49 = vld [vmem:[%s2969_s2 + $0xa8] sm:$0xf0]  ;;  %v1703_v62 = vor.u32 %v2199_v38, %v1700_v43 }
  0x35   : > { %852 = vmatpush.bf16.msrb.mxu1 %v1799_v60  ;;  %v1903_v48 = vor.u32 %v2249_v29, %v1900_v32  ;;  %v2231_v50 = vld [vmem:[%s2969_s2 + $0x124] sm:$0xf]  ;;  %v1828_v54 = vld [vmem:[%s2969_s2 + $0x128] sm:$0xf0]  ;;  %v1767_v2 = vor.u32 %v2215_v44, %v1764_v49  ;;  %v2197_v3 = vld [vmem:[%s2969_s2 + $0x14] sm:$0xf] }
  0x36   : > { %865 = vmatpush.bf16.msrb.mxu2 %v1863_v61  ;;  %v2247_v58 = vld [vmem:[%s2969_s2 + $0x1a4] sm:$0xf]  ;;  %v1892_v63 = vld [vmem:[%s2969_s2 + $0x1a8] sm:$0xf0]  ;;  %v1692_v4 = vld [vmem:[%s2969_s2 + $0x18] sm:$0xf0] }
  0x37   : > { %v352_v30 = vld [vmem:[#allocation2] sm:$0xf]  ;;  %v2213_v8 = vld [vmem:[%s2969_s2 + $0x94] sm:$0xf]  ;;  %v1895_v11 = vor.u32 %v2247_v58, %v1892_v63  ;;  %v1695_v15 = vor.u32 %v2197_v3, %v1692_v4  ;;  %v1884_v17 = vld [vmem:[%s2969_s2 + $0x198] sm:$0xf0] }
  0x38   : > { %878 = vmatpush.bf16.msrb.mxu3 %v1927_v0  ;;  %840 = vmatpush.bf16.msrb.mxu0 %v1727_v7  ;;  %v350_v31 = vld [vmem:[#allocation2] sm:$0x1e]  ;;  %v356_v33 = vrot.slane %v352_v30, 7  ;;  %v353_v35 = vld [vmem:[#allocation2 + $0x8] sm:$0xf]  ;;  %v1831_v7 = vor.u32 %v2231_v50, %v1828_v54  ;;  %v2274_v44 = vld [vmem:[%s2971_s4 + $0x78] sm:$0xff] }
  0x39   : > { %853 = vmatpush.bf16.msrb.mxu1 %v1791_v9  ;;  %v360_v34 = vpack.c.bf16 %v350_v31, %v350_v31  ;;  %v351_v36 = vld [vmem:[#allocation2 + $0x8] sm:$0x1e]  ;;  %v357_v39 = vrot.slane %v353_v35, 7  ;;  %v1756_v9 = vld [vmem:[%s2969_s2 + $0x98] sm:$0xf0]  ;;  %v2280_v38 = vld [vmem:[%s2971_s4 + $0xa8] sm:$0xff] }
  0x3a   : > { %866 = vmatpush.bf16.msrb.mxu2 %v1855_v10  ;;  %v361_v40 = vpack.c.bf16 %v351_v36, %v351_v36  ;;  %v362_v45 = vpack.c.bf16 %v356_v33, %v356_v33  ;;  %v2229_v12 = vld [vmem:[%s2969_s2 + $0x114] sm:$0xf]  ;;  %v1759_v18 = vor.u32 %v2213_v8, %v1756_v9  ;;  %v1684_v20 = vld [vmem:[%s2969_s2 + $0x8] sm:$0xf0]  ;;  %v2227_v25 = vld [vmem:[%s2969_s2 + $0x104] sm:$0xf] }
  0x3b   : > { %v435_v46 = vshrl.u32 %v360_v34, 16  ;;  %v437_v47 = vshll.u32 %v360_v34, 16  ;;  %v363_v51 = vpack.c.bf16 %v357_v39, %v357_v39  ;;  %v2245_v16 = vld [vmem:[%s2969_s2 + $0x194] sm:$0xf]  ;;  %v1748_v23 = vld [vmem:[%s2969_s2 + $0x88] sm:$0xf0] }
  0x3c   : > { %879 = vmatpush.bf16.msrb.mxu3 %v1919_v13  ;;  %841 = vmatpush.bf16.msrb.mxu0 %v1719_v19  ;;  %v442_v52 = vshrl.u32 %v361_v40, 16  ;;  %v444_v53 = vshll.u32 %v361_v40, 16  ;;  %v449_v55 = vshrl.u32 %v362_v45, 16  ;;  %v451_v56 = vshll.u32 %v362_v45, 16  ;;  %v1820_v13 = vld [vmem:[%s2969_s2 + $0x118] sm:$0xf0] }
  0x3d   : > { %854 = vmatpush.bf16.msrb.mxu1 %v1783_v21  ;;  %v439_v57 = vrot.slane %v437_v47, 1  ;;  %v456_v59 = vshrl.u32 %v363_v51, 16  ;;  %v458_v60 = vshll.u32 %v363_v51, 16  ;;  %v2195_v19 = vld [vmem:[%s2969_s2 + $0x4] sm:$0xf]  ;;  %v1823_v21 = vor.u32 %v2229_v12, %v1820_v13  ;;  %v2266_v31 = vld [vmem:[%s2971_s4 + $0x38] sm:$0xff] }
  0x3e   : > { %867 = vmatpush.bf16.msrb.mxu2 %v1847_v22  ;;  %v446_v61 = vrot.slane %v444_v53, 1  ;;  %v453_v0 = vrot.slane %v451_v56, 1  ;;  %v2211_v22 = vld [vmem:[%s2969_s2 + $0x84] sm:$0xf]  ;;  %v1887_v24 = vor.u32 %v2245_v16, %v1884_v17  ;;  %v1687_v27 = vor.u32 %v2195_v19, %v1684_v20  ;;  %v1876_v29 = vld [vmem:[%s2969_s2 + $0x188] sm:$0xf0] }
  0x3f   : > { %v440_v1 = vor.u32 %v439_v57, %v435_v46  ;;  %v460_v5 = vrot.slane %v458_v60, 1  ;;  %v2243_v28 = vld [vmem:[%s2969_s2 + $0x184] sm:$0xf]  ;;  %v1751_v30 = vor.u32 %v2211_v22, %v1748_v23  ;;  %v2282_v34 = vld [vmem:[%s2971_s4 + $0xb8] sm:$0xff]  ;;  %v2265_v35 = vld [vmem:[%s2971_s4 + $0x30] sm:$0xff]  ;;  %vm1599_vm1 = vcmask 130048  }
  0x40   : > { %880 = vmatpush.bf16.msrb.mxu3 %v1911_v26  ;;  %842 = vmatpush.bf16.msrb.mxu0 %v1711_v37  ;;  %v447_v6 = vor.u32 %v446_v61, %v442_v52  ;;  %v454_v10 = vor.u32 %v453_v0, %v449_v55  ;;  %v1812_v26 = vld [vmem:[%s2969_s2 + $0x108] sm:$0xf0]  ;;  %v1879_v33 = vor.u32 %v2243_v28, %v1876_v29  ;;  %v2281_v36 = vld [vmem:[%s2971_s4 + $0xb0] sm:$0xff]  ;;  %v2263_v39 = vld [vmem:[%s2971_s4 + $0x20] sm:$0xff]  ;;  %vm1601_vm2 = vcmask 188416  }
  0x41   : > { %855 = vmatpush.bf16.msrb.mxu1 %v1775_v41  ;;  %794 = vmatmul.bf16.vlgmr.msra.gmra.mxu0 %v440_v1  ;;  %v461_v14 = vor.u32 %v460_v5, %v456_v59  ;;  %v1815_v32 = vor.u32 %v2227_v25, %v1812_v26  ;;  %v2264_v37 = vld [vmem:[%s2971_s4 + $0x28] sm:$0xff]  ;;  %v2279_v40 = vld [vmem:[%s2971_s4 + $0xa0] sm:$0xff]  ;;  %v2262_v41 = vld [vmem:[%s2971_s4 + $0x18] sm:$0xff] }
  0x42   : > { %868 = vmatpush.bf16.msrb.mxu2 %v1839_v42  ;;  %807 = vmatmul.bf16.vlgmr.msra.gmra.mxu1 %v447_v6  ;;  %v2278_v42 = vld [vmem:[%s2971_s4 + $0x98] sm:$0xff]  ;;  %v2261_v43 = vld [vmem:[%s2971_s4 + $0x10] sm:$0xff]  ;;  %v2276_v49 = vld [vmem:[%s2971_s4 + $0x88] sm:$0xff] }
  0x43   : > { %820 = vmatmul.bf16.vlgmr.msra.gmra.mxu2 %v454_v10  ;;  %833 = vmatmul.bf16.vlgmr.msra.gmra.mxu3 %v461_v14  ;;  %v2277_v45 = vld [vmem:[%s2971_s4 + $0x90] sm:$0xff]  ;;  %v2290_v46 = vld [vmem:[%s2971_s4 + $0xf8] sm:$0xff]  ;;  %v428_v50 = vld [vmem:[%s2970_s3] sm:$0x3] }
  0x44   : > { %881 = vmatpush.bf16.msrb.mxu3 %v1903_v48  ;;  %843 = vmatpush.bf16.msrb.mxu0 %v1703_v62  ;;  %v2273_v47 = vld [vmem:[%s2971_s4 + $0x70] sm:$0xff]  ;;  %v2260_v48 = vld [vmem:[%s2971_s4 + $0x8] sm:$0xff]  ;;  %v2259_v51 = vld [vmem:[%s2971_s4] sm:$0xff]  ;;  %v430_v53 = vperm.slane %v428_v50, 0  ;;  %v431_v9 = vperm.slane %v428_v50, 1 }
  0x45   : > { %856 = vmatpush.bf16.msrb.mxu1 %v1767_v2  ;;  %v2275_v52 = vld [vmem:[%s2971_s4 + $0x80] sm:$0xff]  ;;  %v2289_v55 = vld [vmem:[%s2971_s4 + $0xf0] sm:$0xff]  ;;  %v2272_v58 = vld [vmem:[%s2971_s4 + $0x68] sm:$0xff] }
  0x46   : > { %869 = vmatpush.bf16.msrb.mxu2 %v1831_v7  ;;  %v2288_v59 = vld [vmem:[%s2971_s4 + $0xe8] sm:$0xff]  ;;  %v2271_v60 = vld [vmem:[%s2971_s4 + $0x60] sm:$0xff]  ;;  %v2286_v5 = vld [vmem:[%s2971_s4 + $0xd8] sm:$0xff] }
  0x47   : > { %v2287_v62 = vld [vmem:[%s2971_s4 + $0xe0] sm:$0xff]  ;;  %v2269_v7 = vld [vmem:[%s2971_s4 + $0x50] sm:$0xff] }
  0x48   : > { %882 = vmatpush.bf16.msrb.mxu3 %v1895_v11  ;;  %844 = vmatpush.bf16.msrb.mxu0 %v1695_v15  ;;  %v2267_v19 = vld [vmem:[%s2971_s4 + $0x40] sm:$0xff] }
  0x49   : > { %857 = vmatpush.bf16.msrb.mxu1 %v1759_v18  ;;  %v2284_v18 = vld [vmem:[%s2971_s4 + $0xc8] sm:$0xff] }
  0x4a   : > { %870 = vmatpush.bf16.msrb.mxu2 %v1823_v21  ;;  %v2283_v21 = vld [vmem:[%s2971_s4 + $0xc0] sm:$0xff] }
  0x4c   : > { %883 = vmatpush.bf16.msrb.mxu3 %v1887_v24  ;;  %845 = vmatpush.bf16.msrb.mxu0 %v1687_v27 }
  0x4d   : > { %858 = vmatpush.bf16.msrb.mxu1 %v1751_v30 }
  0x4e   : > { %871 = vmatpush.bf16.msrb.mxu2 %v1815_v32 }
  0x50   : > { %1208 = vmatpush.bf16.msra.mxu0 %v2266_v31  ;;  %884 = vmatpush.bf16.msrb.mxu3 %v1879_v33 }
  0x51   : > { %846 = vmatmul.bf16.vlgmr.msrb.gmra.mxu0 %v440_v1  ;;  %1221 = vmatpush.bf16.msra.mxu1 %v2274_v44  ;;  %v2270_v1 = vld [vmem:[%s2971_s4 + $0x58] sm:$0xff] }
  0x52   : > { %859 = vmatmul.bf16.vlgmr.msrb.gmra.mxu1 %v447_v6  ;;  %1234 = vmatpush.bf16.msra.mxu2 %v2282_v34 }
  0x53   : > { %872 = vmatmul.bf16.vlgmr.msrb.gmra.mxu2 %v454_v10  ;;  %885 = vmatmul.bf16.vlgmr.msrb.gmra.mxu3 %v461_v14  ;;  %v2285_v10 = vld [vmem:[%s2971_s4 + $0xd0] sm:$0xff]  ;;  %v2268_v14 = vld [vmem:[%s2971_s4 + $0x48] sm:$0xff] }
  0x54   : > { %1209 = vmatpush.bf16.msra.mxu0 %v2265_v35  ;;  %1247 = vmatpush.bf16.msra.mxu3 %v2290_v46 }
  0x55   : > { %1222 = vmatpush.bf16.msra.mxu1 %v2273_v47 }
  0x56   : > { %1235 = vmatpush.bf16.msra.mxu2 %v2281_v36 }
  0x58   : > { %1210 = vmatpush.bf16.msra.mxu0 %v2264_v37  ;;  %1248 = vmatpush.bf16.msra.mxu3 %v2289_v55 }
  0x59   : > { %1223 = vmatpush.bf16.msra.mxu1 %v2272_v58  ;;  %v2298_v58 = vld [vmem:[#allocation4 + $0x38] sm:$0xff] }
  0x5a   : > { %1236 = vmatpush.bf16.msra.mxu2 %v2280_v38 }
  0x5c   : > { %1211 = vmatpush.bf16.msra.mxu0 %v2263_v39  ;;  %1249 = vmatpush.bf16.msra.mxu3 %v2288_v59  ;;  %v2306_v59 = vld [vmem:[#allocation4 + $0x78] sm:$0xff] }
  0x5d   : > { %1224 = vmatpush.bf16.msra.mxu1 %v2271_v60  ;;  %v2314_v60 = vld [vmem:[#allocation4 + $0xb8] sm:$0xff] }
  0x5e   : > { %1237 = vmatpush.bf16.msra.mxu2 %v2279_v40 }
  0x60   : > { %1212 = vmatpush.bf16.msra.mxu0 %v2262_v41  ;;  %1250 = vmatpush.bf16.msra.mxu3 %v2287_v62  ;;  %v2297_v62 = vld [vmem:[#allocation4 + $0x30] sm:$0xff] }
  0x61   : > { %1225 = vmatpush.bf16.msra.mxu1 %v2270_v1  ;;  %v2296_v1 = vld [vmem:[#allocation4 + $0x28] sm:$0xff] }
  0x62   : > { %1238 = vmatpush.bf16.msra.mxu2 %v2278_v42 }
  0x64   : > { %1213 = vmatpush.bf16.msra.mxu0 %v2261_v43  ;;  %1251 = vmatpush.bf16.msra.mxu3 %v2286_v5  ;;  %v2295_v5 = vld [vmem:[#allocation4 + $0x20] sm:$0xff] }
  0x65   : > { %1226 = vmatpush.bf16.msra.mxu1 %v2269_v7  ;;  %v2303_v7 = vld [vmem:[#allocation4 + $0x60] sm:$0xff] }
  0x66   : > { %1239 = vmatpush.bf16.msra.mxu2 %v2277_v45 }
  0x68   : > { %1214 = vmatpush.bf16.msra.mxu0 %v2260_v48  ;;  %1252 = vmatpush.bf16.msra.mxu3 %v2285_v10  ;;  %v2319_v10 = vld [vmem:[#allocation4 + $0xe0] sm:$0xff] }
  0x69   : > { %1227 = vmatpush.bf16.msra.mxu1 %v2268_v14  ;;  %v2318_v14 = vld [vmem:[#allocation4 + $0xd8] sm:$0xff] }
  0x6a   : > { %1240 = vmatpush.bf16.msra.mxu2 %v2276_v49 }
  0x6c   : > { %1215 = vmatpush.bf16.msra.mxu0 %v2259_v51  ;;  %1253 = vmatpush.bf16.msra.mxu3 %v2284_v18  ;;  %v2317_v18 = vld [vmem:[#allocation4 + $0xd0] sm:$0xff] }
  0x6d   : > { %1228 = vmatpush.bf16.msra.mxu1 %v2267_v19 }
  0x6e   : > { %1241 = vmatpush.bf16.msra.mxu2 %v2275_v52 }
  0x70   : > { %1254 = vmatpush.bf16.msra.mxu3 %v2283_v21  ;;  %1327 = vmatpush.bf16.msrb.mxu0 %v2298_v58  ;;  %v2308_v21 = vld [vmem:[#allocation4 + $0x88] sm:$0xff] }
  0x71   : > { %1409 = vmatpush.bf16.msrb.mxu1 %v2306_v59 }
  0x72   : > { %1490 = vmatpush.bf16.msrb.mxu2 %v2314_v60  ;;  %v1584_v60 = vld [vmem:[%s329_s28] sm:$0x1] }
  0x74   : > { %1328 = vmatpush.bf16.msrb.mxu0 %v2297_v62 }
  0x78   : > { %1329 = vmatpush.bf16.msrb.mxu0 %v2296_v1 }
  0x7c   : > { %1330 = vmatpush.bf16.msrb.mxu0 %v2295_v5 }
  0xbe   : > { %v795_v54 = vpop.f32.mrf.mxu0 }
  0xbf   : > { %v796_v56 = vadd.f32 %v795_v54, %v430_v53  ;;  %v808_v57 = vpop.f32.mrf.mxu1 }
  0xc1   : > { %v809_v61 = vadd.f32 %v808_v57, %v796_v56 }
  0xc6   : > { %v821_v63 = vpop.f32.mrf.mxu2  ;;  %v797_v0 = vpop.f32.mrf.mxu0 }
  0xc7   : > { %v822_v2 = vadd.f32 %v821_v63, %v809_v61  ;;  %v834_v3 = vpop.f32.mrf.mxu3  ;;  %v810_v4 = vpop.f32.mrf.mxu1  ;;  %v2322_v61 = vld [vmem:[#allocation4 + $0xf8] sm:$0xff]  ;;  %v2305_v63 = vld [vmem:[#allocation4 + $0x70] sm:$0xff] }
  0xc8   : > { %1570 = vmatpush.bf16.msrb.mxu3 %v2322_v61  ;;  %v2313_v0 = vld [vmem:[#allocation4 + $0xb0] sm:$0xff]  ;;  %1410 = vmatpush.bf16.msrb.mxu1 %v2305_v63  ;;  %v2312_v4 = vld [vmem:[#allocation4 + $0xa8] sm:$0xff] }
  0xc9   : > { %v835_v6 = vadd.f32 %v834_v3, %v822_v2  ;;  %1491 = vmatpush.bf16.msrb.mxu2 %v2313_v0  ;;  %v2321_v2 = vld [vmem:[#allocation4 + $0xf0] sm:$0xff]  ;;  %v2304_v3 = vld [vmem:[#allocation4 + $0x68] sm:$0xff] }
  0xcb   : > { %v890_v8 = vmax.f32 %v835_v6, 0.0  ;;  %v2320_v6 = vld [vmem:[#allocation4 + $0xe8] sm:$0xff] }
  0xcc   : > { %1571 = vmatpush.bf16.msrb.mxu3 %v2321_v2  ;;  %1411 = vmatpush.bf16.msrb.mxu1 %v2304_v3 }
  0xcd   : > { %v896_v11 = vrot.slane %v890_v8, 7  ;;  %1492 = vmatpush.bf16.msrb.mxu2 %v2312_v4  ;;  %v2311_v8 = vld [vmem:[#allocation4 + $0xa0] sm:$0xff] }
  0xce   : > { %v823_v12 = vpop.f32.mrf.mxu2  ;;  %v847_v13 = vpop.f32.mrf.mxu0 }
  0xcf   : > { %900 = vst [vmem:[#allocation3] sm:$0x1e] %v896_v11  ;;  %v836_v15 = vpop.f32.mrf.mxu3  ;;  %v848_v16 = vadd.f32 %v847_v13, %v431_v9  ;;  %v860_v17 = vpop.f32.mrf.mxu1  ;;  %v2294_v9 = vld [vmem:[#allocation4 + $0x18] sm:$0xff]  ;;  %v2293_v13 = vld [vmem:[#allocation4 + $0x10] sm:$0xff] }
  0xd0   : > { %1572 = vmatpush.bf16.msrb.mxu3 %v2320_v6  ;;  %1412 = vmatpush.bf16.msrb.mxu1 %v2303_v7  ;;  %v2302_v11 = vld [vmem:[#allocation4 + $0x58] sm:$0xff]  ;;  %v2301_v15 = vld [vmem:[#allocation4 + $0x50] sm:$0xff] }
  0xd1   : > { %v861_v20 = vadd.f32 %v860_v17, %v848_v16  ;;  %1493 = vmatpush.bf16.msrb.mxu2 %v2311_v8  ;;  %v2310_v12 = vld [vmem:[#allocation4 + $0x98] sm:$0xff]  ;;  %1331 = vmatpush.bf16.msrb.mxu0 %v2294_v9  ;;  %v2309_v16 = vld [vmem:[#allocation4 + $0x90] sm:$0xff]  ;;  %v2292_v17 = vld [vmem:[#allocation4 + $0x8] sm:$0xff] }
  0xd4   : > { %1573 = vmatpush.bf16.msrb.mxu3 %v2319_v10  ;;  %1413 = vmatpush.bf16.msrb.mxu1 %v2302_v11 }
  0xd5   : > { %1494 = vmatpush.bf16.msrb.mxu2 %v2310_v12  ;;  %1332 = vmatpush.bf16.msrb.mxu0 %v2293_v13 }
  0xd6   : > { %v902_v22 = vld [vmem:[#allocation3] sm:$0x1e]  ;;  %v873_v23 = vpop.f32.mrf.mxu2  ;;  %v849_v25 = vpop.f32.mrf.mxu0 }
  0xd7   : > { %v904_v24 = vld [vmem:[#allocation3] sm:$0xf]  ;;  %v912_v26 = vpack.c.bf16 %v902_v22, %v902_v22  ;;  %v874_v27 = vadd.f32 %v873_v23, %v861_v20  ;;  %v886_v28 = vpop.f32.mrf.mxu3  ;;  %v862_v30 = vpop.f32.mrf.mxu1  ;;  %v2300_v20 = vld [vmem:[#allocation4 + $0x48] sm:$0xff]  ;;  %v2291_v22 = vld [vmem:[#allocation4] sm:$0xff] }
  0xd8   : > { %v908_v29 = vrot.slane %v904_v24, 7  ;;  %1574 = vmatpush.bf16.msrb.mxu3 %v2318_v14  ;;  %1414 = vmatpush.bf16.msrb.mxu1 %v2301_v15  ;;  %v2316_v23 = vld [vmem:[#allocation4 + $0xc8] sm:$0xff]  ;;  %v2299_v24 = vld [vmem:[#allocation4 + $0x40] sm:$0xff] }
  0xd9   : > { %v985_v31 = vshrl.u32 %v912_v26, 16  ;;  %v987_v32 = vshll.u32 %v912_v26, 16  ;;  %v887_v33 = vadd.f32 %v886_v28, %v874_v27  ;;  %1495 = vmatpush.bf16.msrb.mxu2 %v2309_v16  ;;  %1333 = vmatpush.bf16.msrb.mxu0 %v2292_v17  ;;  %v2307_v25 = vld [vmem:[#allocation4 + $0x80] sm:$0xff] }
  0xda   : > { %v914_v34 = vpack.c.bf16 %v908_v29, %v908_v29  ;;  %v2315_v26 = vld [vmem:[#allocation4 + $0xc0] sm:$0xff]  ;;  %v2347_v29 = vld [vmem:[%s2972_s5] ss:$0 sm:$0xff] }
  0xdb   : > { %v989_v35 = vrot.slane %v987_v32, 1  ;;  %v891_v36 = vmax.f32 %v887_v33, 0.0 }
  0xdc   : > { %v999_v37 = vshrl.u32 %v914_v34, 16  ;;  %v1001_v38 = vshll.u32 %v914_v34, 16  ;;  %1575 = vmatpush.bf16.msrb.mxu3 %v2317_v18  ;;  %1415 = vmatpush.bf16.msrb.mxu1 %v2300_v20 }
  0xdd   : > { %v990_v39 = vor.u32 %v989_v35, %v985_v31  ;;  %v897_v40 = vrot.slane %v891_v36, 7  ;;  %1496 = vmatpush.bf16.msrb.mxu2 %v2308_v21  ;;  %1334 = vmatpush.bf16.msrb.mxu0 %v2291_v22 }
  0xde   : > { %v1003_v41 = vrot.slane %v1001_v38, 1  ;;  %v875_v42 = vpop.f32.mrf.mxu2 }
  0xdf   : > { %1216 = vmatmul.bf16.vlgmr.msra.gmra.mxu0 %v990_v39  ;;  %901 = vst [vmem:[#allocation3 + $0x8] sm:$0x1e] %v897_v40  ;;  %v888_v44 = vpop.f32.mrf.mxu3 }
  0xe0   : > { %v1004_v43 = vor.u32 %v1003_v41, %v999_v37  ;;  %1576 = vmatpush.bf16.msrb.mxu3 %v2316_v23  ;;  %1416 = vmatpush.bf16.msrb.mxu1 %v2299_v24  ;;  %v1261_v44 = vld [vmem:[%s2974_s7] sm:$0x1] }
  0xe1   : > { %1497 = vmatpush.bf16.msrb.mxu2 %v2307_v25 }
  0xe2   : > { %1242 = vmatmul.bf16.vlgmr.msra.gmra.mxu2 %v1004_v43 }
  0xe4   : > { %1577 = vmatpush.bf16.msrb.mxu3 %v2315_v26 }
  0xe6   : > { %v903_v45 = vld [vmem:[#allocation3 + $0x8] sm:$0x1e] }
  0xe7   : > { %v905_v46 = vld [vmem:[#allocation3 + $0x8] sm:$0xf]  ;;  %v913_v47 = vpack.c.bf16 %v903_v45, %v903_v45 }
  0xe8   : > { %v909_v48 = vrot.slane %v905_v46, 7 }
  0xe9   : > { %v994_v49 = vshll.u32 %v913_v47, 16  ;;  %v992_v51 = vshrl.u32 %v913_v47, 16 }
  0xea   : > { %v915_v50 = vpack.c.bf16 %v909_v48, %v909_v48 }
  0xeb   : > { %v996_v52 = vrot.slane %v994_v49, 1 }
  0xec   : > { %v1008_v53 = vshll.u32 %v915_v50, 16  ;;  %v1006_v55 = vshrl.u32 %v915_v50, 16 }
  0xed   : > { %v997_v54 = vor.u32 %v996_v52, %v992_v51 }
  0xee   : > { %v1010_v56 = vrot.slane %v1008_v53, 1 }
  0xef   : > { %1229 = vmatmul.bf16.vlgmr.msra.gmra.mxu1 %v997_v54 }
  0xf0   : > { %v1011_v57 = vor.u32 %v1010_v56, %v1006_v55 }
  0xf2   : > { %1255 = vmatmul.bf16.vlgmr.msra.gmra.mxu3 %v1011_v57 }
 0x15c   : > { %v1217_v19 = vpop.f32.mrf.mxu0 }
 0x15d   : > { %v1218_v32 = vadd.f32 %v2347_v29, %v1217_v19 }
 0x164   : > { %v1219_v27 = vpop.f32.mrf.mxu0 }
 0x165   : > { %v1243_v28 = vpop.f32.mrf.mxu2 }
 0x16c   : > { %v1230_v31 = vpop.f32.mrf.mxu1 }
 0x16d   : > { %v1245_v30 = vpop.f32.mrf.mxu2  ;;  %v1231_v33 = vadd.f32 %v1230_v31, %v1218_v32 }
 0x16f   : > { %v1244_v34 = vadd.f32 %v1243_v28, %v1231_v33 }
 0x174   : > { %v1232_v35 = vpop.f32.mrf.mxu1 }
 0x175   : > { %v1256_v36 = vpop.f32.mrf.mxu3 }
 0x176   : > { %v1257_v37 = vadd.f32 %v1256_v36, %v1244_v34 }
 0x178   : > { %v1260_v38 = vmax.f32 %v1257_v37, 0.0 }
 0x17a   : > { %v1262_v39 = vpack.c.bf16 %v1260_v38, %v1260_v38 }
 0x17c   : > { %v1358_v40 = vshrl.u32 %v1262_v39, 16  ;;  %v1440_v41 = vrot.slane %v1262_v39, 1  ;;  %1335 = vmatmul.bf16.vlgmr.msrb.gmra.mxu0 %v1262_v39 }
 0x17d   : > { %v1258_v42 = vpop.f32.mrf.mxu3 }
 0x17e   : > { %1417 = vmatmul.bf16.vlgmr.msrb.gmra.mxu1 %v1358_v40  ;;  %1498 = vmatmul.bf16.vlgmr.msrb.gmra.mxu2 %v1440_v41  ;;  %v1520_v43 = vrot.slane %v1358_v40, 1 }
 0x180   : > { %1578 = vmatmul.bf16.vlgmr.msrb.gmra.mxu3 %v1520_v43 }
 0x1f9   : > { %v1336_v45 = vpop.f32.mrf.mxu0 }
 0x1fa   : > { %v1340_v47 = vadd.f32 %v1336_v45, %v1261_v44 }
 0x1fb   : > { %v1418_v46 = vpop.f32.mrf.mxu1 }
 0x1fc   : > { %v1422_v48 = vadd.f32 %v1418_v46, %v1340_v47 }
 0x201   : > { %v1338_v49 = vpop.f32.mrf.mxu0  ;;  %v1499_v50 = vpop.f32.mrf.mxu2 }
 0x202   : > { %v1503_v51 = vadd.f32 %v1499_v50, %v1422_v48 }
 0x203   : > { %v1420_v52 = vpop.f32.mrf.mxu1  ;;  %v1579_v53 = vpop.f32.mrf.mxu3 }
 0x204   : > { %v1583_v54 = vadd.f32 %v1579_v53, %v1503_v51 }
 0x206   : > { %v1585_v55 = vmul.f32 0.5, %v1583_v54 }
 0x208   : > { %v1586_v56 = vmul.f32 1.442695, %v1585_v55 }
 0x209   : > { %v1501_v57 = vpop.f32.mrf.mxu2 }
 0x20a   : > { %2348 = vpow2.f32 %v1586_v56 }
 0x20b   : > { %v1581_v58 = vpop.f32.mrf.mxu3 }
 0x210   : > { %v2349_v59 = vpop.eup %2348 }
 0x211   : > { %1589 = vrot.lane.b32.xlu0 %v2349_v59, %s2396_s25 }
 0x283   : > { %v1590_v61 = vpop.permute.xlu0 %1589 }
 0x284   : > { %v1592_v62 = vmul.f32 %v1590_v61, %v1584_v60 }
 0x286   : > { %v1593_v63 = vadd.f32 %v1592_v62, %v1583_v54 }
 0x288   : > { %v1595_v0 = vperm.slane %v1593_v63, 0 }
 0x28a   : > { %1596 = vrot.lane.b32.xlu0 %v1595_v0, %s2397_s29 }
 0x2fc   : > { %v1597_v1 = vpop.permute.xlu0 %1596 }
 0x2fd   : > { %v1600_v2 = vsel %vm1599_vm1, %v1583_v54, %v1597_v1 }
 0x2fe   : > { %1602 = vst.msk [vmem:[%s332_s12] sm:$0x1] %vm1601_vm2, %v1600_v2 }
 0x2ff PF: > { %s19_s27 = sadd.s32 1, %s2390_s27  }
 0x300   : > { %p16_p7 = scmp.ge.s32.totalorder %s19_s27, 4  }
 0x302   :  { %18 = sbr.rel (!%p16_p7) target bundleno = 1 (0x1), region = 90 }
 0x307   :  { %1620 = vsyncpa [#allocation5], 1 }
 0x308   :  { %1622 = vsyncpa [#allocation5 + $0x1], 1 }

// kernel: forward.3
= control target key start
LH: loop header
LB: loop body
LE: loop exit
PB: predicated region body
PF: predicated region fallthrough
CT: control target
= control target key end

     0   :  { %s2482_s24 = smov 0   ;;  %s3427_s0 = inlined_call_operand.vmem [shape: f32[2,1,8], index: 0, kind: input, shape index: {}]   ;;  %s3428_s1 = inlined_call_operand.vmem [shape: bf16[8,512], index: 1, kind: input, shape index: {}]   ;;  %s3429_s2 = inlined_call_operand.vmem [shape: f32[1,512], index: 2, kind: input, shape index: {}]   ;;  %s3430_s3 = inlined_call_operand.vmem [shape: bf16[384,256], index: 3, kind: input, shape index: {}]   ;;  %s3431_s4 = inlined_call_operand.vmem [shape: f32[1,256], index: 4, kind: input, shape index: {}, may-alias: {4,6}]   ;;  %s3432_s5 = inlined_call_operand.vmem [shape: bf16[768,256], index: 5, kind: input, shape index: {}]   ;;  %s3433_s6 = inlined_call_operand.vmem [shape: f32[1,256], index: 6, kind: input, shape index: {}, may-alias: {4,6}]   ;;  %s3434_s7 = inlined_call_operand.vmem [shape: f32[2,4,256], index: 7, kind: output, shape index: {}]  }
   0x1 LB: > { %s1680_s25 = sadd.s32 4294967295, %s2439_s24   ;;  %p1684_p0 = scmp.ge.s32.totalorder %s2439_s24, 1  ;;  %s2439_s24 = sphi %s2482_s24, %s17_s24  }
   0x2   : > { %p235_p1 = scmp.lt.s32.totalorder %s2439_s24, 3 }
   0x4   : > { %p236_p2 = pnand %p1684_p0, %p235_p1 }
   0x5   : > { %p265_p3 = scmp.lt.s32.totalorder (!%p236_p2), %s1680_s25, 1 }
   0x6   : > { %239 = sbr.rel (%p236_p2) target bundleno = 550 (0x226), region = 48 }
   0xb   : > { %v276_v0 = vld [vmem:[%s3428_s1] sm:$0xff]  ;;  %v277_v1 = vld [vmem:[%s3428_s1 + $0x8] sm:$0xff]  ;;  %v1749_v6 = vld [vmem:[%s3430_s3 + $0x70] sm:$0xf]  ;;  %vm302_vm0 = vcmask 1043456   ;;  %s3438_s25 = smov (!%p265_p3, %s1680_s25), 1 }
   0xc   : > { %v281_v2 = vunpack.c.l.b16 %v276_v0  ;;  %v282_v3 = vunpack.c.h.b16 %v276_v0  ;;  %v283_v4 = vunpack.c.l.b16 %v277_v1  ;;  %v284_v5 = vunpack.c.h.b16 %v277_v1  ;;  %v2287_v7 = vld [vmem:[%s3430_s3 + $0x74] sm:$0xf0]  ;;  %v1813_v8 = vld [vmem:[%s3430_s3 + $0xf0] sm:$0xf]  ;;  %v1741_v11 = vld [vmem:[%s3430_s3 + $0x60] sm:$0xf]  ;;  %s267_s23 = scalar_lea.vmem %s3427_s0, %s3438_s25 }
   0xd   : > { %v1750_v9 = vor.u32 %v2287_v7, %v1749_v6  ;;  %v2303_v10 = vld [vmem:[%s3430_s3 + $0xf4] sm:$0xf0]  ;;  %v2285_v16 = vld [vmem:[%s3430_s3 + $0x64] sm:$0xf0]  ;;  %v1805_v17 = vld [vmem:[%s3430_s3 + $0xe0] sm:$0xf] }
   0xe   : > { %v285_v12 = vpack.c.b16 %v281_v2, %v281_v2  ;;  %v286_v13 = vpack.c.b16 %v282_v3, %v282_v3  ;;  %v287_v14 = vpack.c.b16 %v283_v4, %v283_v4  ;;  %v288_v15 = vpack.c.b16 %v284_v5, %v284_v5  ;;  %v2301_v20 = vld [vmem:[%s3430_s3 + $0xe4] sm:$0xf0]  ;;  %v1733_v21 = vld [vmem:[%s3430_s3 + $0x50] sm:$0xf]  ;;  %v2283_v22 = vld [vmem:[%s3430_s3 + $0x54] sm:$0xf0] }
   0xf   : > { %677 = vmatpush.bf16.msra.mxu0 %v1750_v9  ;;  %v1814_v18 = vor.u32 %v2303_v10, %v1813_v8  ;;  %v1742_v19 = vor.u32 %v2285_v16, %v1741_v11  ;;  %v274_v25 = vld [vmem:[%s267_s23] sm:$0x1]  ;;  %vm298_vm1 = vcmask 64512   ;;  %v1806_v29 = vor.u32 %v2301_v20, %v1805_v17  ;;  %v1797_v31 = vld [vmem:[%s3430_s3 + $0xd0] sm:$0xf]  ;;  %s2271_s27 = sshll.u32 %s3438_s25, 3 }
  0x10   : > { %v304_v23 = vsel %vm302_vm0, %v285_v12, 0  ;;  %v307_v24 = vsel %vm302_vm0, %v286_v13, 0  ;;  %v310_v26 = vsel %vm302_vm0, %v287_v14, 0  ;;  %v313_v27 = vsel %vm302_vm0, %v288_v15, 0  ;;  %v2299_v32 = vld [vmem:[%s3430_s3 + $0xd4] sm:$0xf0]  ;;  %s272_s30 = scalar_lea.vmem %s3434_s7, %s2271_s27 }
  0x11   : > { %322 = vmatpush.bf16.msra.mxu2 %v304_v23  ;;  %335 = vmatpush.bf16.msra.mxu3 %v307_v24  ;;  %v275_v28 = vpack.c.bf16 %v274_v25, %v274_v25  ;;  %v1734_v30 = vor.u32 %v2283_v22, %v1733_v21  ;;  %v1725_v33 = vld [vmem:[%s3430_s3 + $0x40] sm:$0xf]  ;;  %v2281_v34 = vld [vmem:[%s3430_s3 + $0x44] sm:$0xf0]  ;;  %v1798_v35 = vor.u32 %v2299_v32, %v1797_v31  ;;  %v1877_v40 = vld [vmem:[%s3430_s3 + $0x170] sm:$0xf] }
  0x12   : > { %690 = vmatpush.bf16.msra.mxu1 %v1814_v18  ;;  %v1726_v36 = vor.u32 %v2281_v34, %v1725_v33  ;;  %v1789_v37 = vld [vmem:[%s3430_s3 + $0xc0] sm:$0xf]  ;;  %v2297_v38 = vld [vmem:[%s3430_s3 + $0xc4] sm:$0xf0]  ;;  %v2319_v41 = vld [vmem:[%s3430_s3 + $0x174] sm:$0xf0] }
  0x13   : > { %678 = vmatpush.bf16.msra.mxu0 %v1742_v19  ;;  %v1790_v39 = vor.u32 %v2297_v38, %v1789_v37  ;;  %v2286_v42 = vld [vmem:[%s3430_s3 + $0x74] sm:$0xf]  ;;  %v1878_v43 = vor.u32 %v2319_v41, %v1877_v40  ;;  %v1751_v44 = vld [vmem:[%s3430_s3 + $0x78] sm:$0xf0]  ;;  %v1717_v46 = vld [vmem:[%s3430_s3 + $0x30] sm:$0xf] }
  0x14   : > { %1687 = vmatmul.msk.bf16.vlgmr.msra.gmra.mxu2 %vm298_vm1, %v275_v28  ;;  %1688 = vmatmul.msk.bf16.vlgmr.msra.gmra.mxu3 %vm298_vm1, %v275_v28  ;;  %v1754_v45 = vor.u32 %v2286_v42, %v1751_v44  ;;  %v2279_v47 = vld [vmem:[%s3430_s3 + $0x34] sm:$0xf0]  ;;  %v1781_v48 = vld [vmem:[%s3430_s3 + $0xb0] sm:$0xf]  ;;  %v1869_v51 = vld [vmem:[%s3430_s3 + $0x160] sm:$0xf] }
  0x15   : > { %348 = vmatpush.bf16.msrb.mxu2 %v310_v26  ;;  %361 = vmatpush.bf16.msrb.mxu3 %v313_v27  ;;  %v1718_v49 = vor.u32 %v2279_v47, %v1717_v46  ;;  %v2295_v50 = vld [vmem:[%s3430_s3 + $0xb4] sm:$0xf0]  ;;  %v2317_v53 = vld [vmem:[%s3430_s3 + $0x164] sm:$0xf0]  ;;  %v2284_v54 = vld [vmem:[%s3430_s3 + $0x64] sm:$0xf] }
  0x16   : > { %691 = vmatpush.bf16.msra.mxu1 %v1806_v29  ;;  %v1782_v52 = vor.u32 %v2295_v50, %v1781_v48  ;;  %v1743_v55 = vld [vmem:[%s3430_s3 + $0x68] sm:$0xf0]  ;;  %v1870_v56 = vor.u32 %v2317_v53, %v1869_v51  ;;  %v1709_v58 = vld [vmem:[%s3430_s3 + $0x20] sm:$0xf]  ;;  %v2277_v59 = vld [vmem:[%s3430_s3 + $0x24] sm:$0xf0] }
  0x17   : > { %679 = vmatpush.bf16.msra.mxu0 %v1734_v30  ;;  %v1746_v57 = vor.u32 %v2284_v54, %v1743_v55  ;;  %v1773_v60 = vld [vmem:[%s3430_s3 + $0xa0] sm:$0xf]  ;;  %v1710_v61 = vor.u32 %v2277_v59, %v1709_v58  ;;  %v2293_v62 = vld [vmem:[%s3430_s3 + $0xa4] sm:$0xf0]  ;;  %v1861_v63 = vld [vmem:[%s3430_s3 + $0x150] sm:$0xf] }
  0x18   : > { %v2315_v0 = vld [vmem:[%s3430_s3 + $0x154] sm:$0xf0]  ;;  %v1774_v1 = vor.u32 %v2293_v62, %v1773_v60  ;;  %v2282_v3 = vld [vmem:[%s3430_s3 + $0x54] sm:$0xf]  ;;  %v1735_v4 = vld [vmem:[%s3430_s3 + $0x58] sm:$0xf0] }
  0x19   : > { %703 = vmatpush.bf16.msra.mxu2 %v1878_v43  ;;  %716 = vmatpush.bf16.msra.mxu3 %v1754_v45  ;;  %v1862_v2 = vor.u32 %v2315_v0, %v1861_v63  ;;  %v1738_v5 = vor.u32 %v2282_v3, %v1735_v4  ;;  %v1701_v6 = vld [vmem:[%s3430_s3 + $0x10] sm:$0xf]  ;;  %v2275_v7 = vld [vmem:[%s3430_s3 + $0x14] sm:$0xf0]  ;;  %v1853_v11 = vld [vmem:[%s3430_s3 + $0x140] sm:$0xf] }
  0x1a   : > { %692 = vmatpush.bf16.msra.mxu1 %v1798_v35  ;;  %v1765_v8 = vld [vmem:[%s3430_s3 + $0x90] sm:$0xf]  ;;  %v1702_v9 = vor.u32 %v2275_v7, %v1701_v6  ;;  %v2291_v10 = vld [vmem:[%s3430_s3 + $0x94] sm:$0xf0]  ;;  %v2313_v12 = vld [vmem:[%s3430_s3 + $0x144] sm:$0xf0] }
  0x1b   : > { %680 = vmatpush.bf16.msra.mxu0 %v1726_v36  ;;  %v1766_v13 = vor.u32 %v2291_v10, %v1765_v8  ;;  %v1854_v14 = vor.u32 %v2313_v12, %v1853_v11  ;;  %v2280_v15 = vld [vmem:[%s3430_s3 + $0x44] sm:$0xf]  ;;  %v1727_v16 = vld [vmem:[%s3430_s3 + $0x48] sm:$0xf0]  ;;  %v1693_v17 = vld [vmem:[%s3430_s3] sm:$0xf] }
  0x1c   : > { %v1730_v18 = vor.u32 %v2280_v15, %v1727_v16  ;;  %v2273_v19 = vld [vmem:[%s3430_s3 + $0x4] sm:$0xf0]  ;;  %v1757_v20 = vld [vmem:[%s3430_s3 + $0x80] sm:$0xf]  ;;  %v1845_v24 = vld [vmem:[%s3430_s3 + $0x130] sm:$0xf]  ;;  %v757_v15 = vlaneseq }
  0x1d   : > { %704 = vmatpush.bf16.msra.mxu2 %v1870_v56  ;;  %717 = vmatpush.bf16.msra.mxu3 %v1746_v57  ;;  %v2289_v21 = vld [vmem:[%s3430_s3 + $0x84] sm:$0xf0]  ;;  %v1694_v22 = vor.u32 %v2273_v19, %v1693_v17  ;;  %v2311_v25 = vld [vmem:[%s3430_s3 + $0x134] sm:$0xf0]  ;;  %v2278_v26 = vld [vmem:[%s3430_s3 + $0x34] sm:$0xf] }
  0x1e   : > { %693 = vmatpush.bf16.msra.mxu1 %v1790_v39  ;;  %v1758_v23 = vor.u32 %v2289_v21, %v1757_v20  ;;  %v1846_v27 = vor.u32 %v2311_v25, %v1845_v24  ;;  %v2302_v29 = vld [vmem:[%s3430_s3 + $0xf4] sm:$0xf]  ;;  %v1815_v31 = vld [vmem:[%s3430_s3 + $0xf8] sm:$0xf0]  ;;  %v1837_v36 = vld [vmem:[%s3430_s3 + $0x120] sm:$0xf] }
  0x1f   : > { %681 = vmatpush.bf16.msra.mxu0 %v1718_v49  ;;  %v2318_v32 = vld [vmem:[%s3430_s3 + $0x174] sm:$0xf]  ;;  %v1879_v33 = vld [vmem:[%s3430_s3 + $0x178] sm:$0xf0]  ;;  %v1818_v34 = vor.u32 %v2302_v29, %v1815_v31  ;;  %v2309_v37 = vld [vmem:[%s3430_s3 + $0x124] sm:$0xf0] }
  0x20   : > { %v1882_v35 = vor.u32 %v2318_v32, %v1879_v33  ;;  %v2276_v38 = vld [vmem:[%s3430_s3 + $0x24] sm:$0xf]  ;;  %v1838_v39 = vor.u32 %v2309_v37, %v1837_v36  ;;  %v1711_v40 = vld [vmem:[%s3430_s3 + $0x28] sm:$0xf0]  ;;  %v1829_v48 = vld [vmem:[%s3430_s3 + $0x110] sm:$0xf] }
  0x21   : > { %705 = vmatpush.bf16.msra.mxu2 %v1862_v2  ;;  %718 = vmatpush.bf16.msra.mxu3 %v1738_v5  ;;  %v2300_v41 = vld [vmem:[%s3430_s3 + $0xe4] sm:$0xf]  ;;  %v1807_v42 = vld [vmem:[%s3430_s3 + $0xe8] sm:$0xf0]  ;;  %v1714_v43 = vor.u32 %v2276_v38, %v1711_v40  ;;  %v2307_v49 = vld [vmem:[%s3430_s3 + $0x114] sm:$0xf0] }
  0x22   : > { %694 = vmatpush.bf16.msra.mxu1 %v1782_v52  ;;  %v1810_v44 = vor.u32 %v2300_v41, %v1807_v42  ;;  %v2316_v45 = vld [vmem:[%s3430_s3 + $0x164] sm:$0xf]  ;;  %v1871_v46 = vld [vmem:[%s3430_s3 + $0x168] sm:$0xf0]  ;;  %v2274_v50 = vld [vmem:[%s3430_s3 + $0x14] sm:$0xf]  ;;  %v1830_v51 = vor.u32 %v2307_v49, %v1829_v48 }
  0x23   : > { %682 = vmatpush.bf16.msra.mxu0 %v1710_v61  ;;  %v1874_v47 = vor.u32 %v2316_v45, %v1871_v46  ;;  %v1703_v52 = vld [vmem:[%s3430_s3 + $0x18] sm:$0xf0]  ;;  %v2298_v53 = vld [vmem:[%s3430_s3 + $0xd4] sm:$0xf]  ;;  %v2723_v55 = vld [vmem:[%s3429_s2] sm:$0xf] }
  0x24   : > { %1689 = vmatmul.msk.bf16.vlgmr.msrb.gmra.mxu2 %vm298_vm1, %v275_v28  ;;  %1690 = vmatmul.msk.bf16.vlgmr.msrb.gmra.mxu3 %vm298_vm1, %v275_v28  ;;  %v1719_v28 = vld [vmem:[%s3430_s3 + $0x38] sm:$0xf0]  ;;  %v1706_v56 = vor.u32 %v2274_v50, %v1703_v52  ;;  %v2314_v58 = vld [vmem:[%s3430_s3 + $0x154] sm:$0xf]  ;;  %v1821_v60 = vld [vmem:[%s3430_s3 + $0x100] sm:$0xf] }
  0x25   : > { %706 = vmatpush.bf16.msra.mxu2 %v1854_v14  ;;  %719 = vmatpush.bf16.msra.mxu3 %v1730_v18  ;;  %v1722_v30 = vor.u32 %v2278_v26, %v1719_v28  ;;  %v1799_v54 = vld [vmem:[%s3430_s3 + $0xd8] sm:$0xf0]  ;;  %v2305_v62 = vld [vmem:[%s3430_s3 + $0x104] sm:$0xf0]  ;;  %v2272_v63 = vld [vmem:[%s3430_s3 + $0x4] sm:$0xf] }
  0x26   : > { %695 = vmatpush.bf16.msra.mxu1 %v1774_v1  ;;  %v1802_v57 = vor.u32 %v2298_v53, %v1799_v54  ;;  %v1863_v59 = vld [vmem:[%s3430_s3 + $0x158] sm:$0xf0]  ;;  %v1695_v0 = vld [vmem:[%s3430_s3 + $0x8] sm:$0xf0]  ;;  %v1822_v1 = vor.u32 %v2305_v62, %v1821_v60  ;;  %v2296_v3 = vld [vmem:[%s3430_s3 + $0xc4] sm:$0xf] }
  0x27   : > { %683 = vmatpush.bf16.msra.mxu0 %v1702_v9  ;;  %v1866_v61 = vor.u32 %v2314_v58, %v1863_v59  ;;  %v1698_v2 = vor.u32 %v2272_v63, %v1695_v0  ;;  %v1791_v4 = vld [vmem:[%s3430_s3 + $0xc8] sm:$0xf0]  ;;  %v2312_v5 = vld [vmem:[%s3430_s3 + $0x144] sm:$0xf]  ;;  %v2441_v8 = vmov 0.0   ;;  %v290_v10 = vperm.slane %v2723_v55, 0 }
  0x28   : > { %v1794_v6 = vor.u32 %v2296_v3, %v1791_v4  ;;  %v1855_v7 = vld [vmem:[%s3430_s3 + $0x148] sm:$0xf0]  ;;  %371 = vst [vmem:[#allocation2] sm:$0x1] %v2441_v8  ;;  %v291_v11 = vperm.slane %v2723_v55, 1  ;;  %vm759_vm2 = vcmp.lt.s32.totalorder %v757_v15, 256 }
  0x29   : > { %707 = vmatpush.bf16.msra.mxu2 %v1846_v27  ;;  %720 = vmatpush.bf16.msra.mxu3 %v1722_v30  ;;  %v1858_v9 = vor.u32 %v2312_v5, %v1855_v7  ;;  %372 = vst [vmem:[#allocation2 + $0x5] sm:$0x1] %v2441_v8  ;;  %v2294_v12 = vld [vmem:[%s3430_s3 + $0xb4] sm:$0xf]  ;;  %v1847_v17 = vld [vmem:[%s3430_s3 + $0x138] sm:$0xf0] }
  0x2a   : > { %696 = vmatpush.bf16.msra.mxu1 %v1766_v13  ;;  %v1783_v13 = vld [vmem:[%s3430_s3 + $0xb8] sm:$0xf0]  ;;  %v2310_v14 = vld [vmem:[%s3430_s3 + $0x134] sm:$0xf]  ;;  %v2292_v21 = vld [vmem:[%s3430_s3 + $0xa4] sm:$0xf] }
  0x2b   : > { %684 = vmatpush.bf16.msra.mxu0 %v1694_v22  ;;  %v1786_v16 = vor.u32 %v2294_v12, %v1783_v13  ;;  %v1850_v20 = vor.u32 %v2310_v14, %v1847_v17  ;;  %v1775_v22 = vld [vmem:[%s3430_s3 + $0xa8] sm:$0xf0]  ;;  %761 = vst.msk [vmem:[#allocation3] ss:$8 sm:$0x3] %vm759_vm2, %v2441_v8  ;;  %v292_v45 = vperm.slane %v2723_v55, 2 }
  0x2c   : > { %v1839_v26 = vld [vmem:[%s3430_s3 + $0x128] sm:$0xf0]  ;;  %v2290_v27 = vld [vmem:[%s3430_s3 + $0x94] sm:$0xf]  ;;  %v1778_v30 = vor.u32 %v2292_v21, %v1775_v22  ;;  %v1767_v32 = vld [vmem:[%s3430_s3 + $0x98] sm:$0xf0] }
  0x2d   : > { %708 = vmatpush.bf16.msra.mxu2 %v1838_v39  ;;  %721 = vmatpush.bf16.msra.mxu3 %v1714_v43  ;;  %764 = vst.msk [vmem:[#allocation3 + $0x5] ss:$8 sm:$0x3] %vm759_vm2, %v2441_v8  ;;  %v2306_v33 = vld [vmem:[%s3430_s3 + $0x114] sm:$0xf]  ;;  %v293_v46 = vperm.slane %v2723_v55, 3 }
  0x2e   : > { %697 = vmatpush.bf16.msra.mxu1 %v1758_v23  ;;  %v2308_v23 = vld [vmem:[%s3430_s3 + $0x124] sm:$0xf]  ;;  %v1759_v40 = vld [vmem:[%s3430_s3 + $0x88] sm:$0xf0]  ;;  %v1941_v49 = vld [vmem:[%s3432_s5 + $0x70] sm:$0xf] }
  0x2f   : > { %729 = vmatpush.bf16.msrb.mxu0 %v1818_v34  ;;  %v1842_v31 = vor.u32 %v2308_v23, %v1839_v26  ;;  %v1831_v34 = vld [vmem:[%s3430_s3 + $0x118] sm:$0xf0]  ;;  %v2288_v37 = vld [vmem:[%s3430_s3 + $0x84] sm:$0xf]  ;;  %v1823_v42 = vld [vmem:[%s3430_s3 + $0x108] sm:$0xf0] }
  0x30   : > { %v1834_v36 = vor.u32 %v2306_v33, %v1831_v34  ;;  %v2304_v41 = vld [vmem:[%s3430_s3 + $0x104] sm:$0xf]  ;;  %v1762_v43 = vor.u32 %v2288_v37, %v1759_v40  ;;  %v2335_v50 = vld [vmem:[%s3432_s5 + $0x74] sm:$0xf0]  ;;  %v1933_v54 = vld [vmem:[%s3432_s5 + $0x60] sm:$0xf] }
  0x31   : > { %709 = vmatpush.bf16.msra.mxu2 %v1830_v51  ;;  %722 = vmatpush.bf16.msra.mxu3 %v1706_v56  ;;  %v1942_v53 = vor.u32 %v2335_v50, %v1941_v49  ;;  %v2333_v55 = vld [vmem:[%s3432_s5 + $0x64] sm:$0xf0]  ;;  %v1925_v59 = vld [vmem:[%s3432_s5 + $0x50] sm:$0xf]  ;;  %v2331_v60 = vld [vmem:[%s3432_s5 + $0x54] sm:$0xf0] }
  0x32   : > { %742 = vmatpush.bf16.msrb.mxu1 %v1882_v35  ;;  %v1770_v35 = vor.u32 %v2290_v27, %v1767_v32  ;;  %v1934_v58 = vor.u32 %v2333_v55, %v1933_v54  ;;  %v2351_v62 = vld [vmem:[%s3432_s5 + $0xf4] sm:$0xf0]  ;;  %v1926_v0 = vor.u32 %v2331_v60, %v1925_v59  ;;  %v1997_v3 = vld [vmem:[%s3432_s5 + $0xe0] sm:$0xf]  ;;  %v2349_v4 = vld [vmem:[%s3432_s5 + $0xe4] sm:$0xf0] }
  0x33   : > { %730 = vmatpush.bf16.msrb.mxu0 %v1810_v44  ;;  %v1826_v44 = vor.u32 %v2304_v41, %v1823_v42  ;;  %v2069_v5 = vld [vmem:[%s3432_s5 + $0x170] sm:$0xf]  ;;  %v1998_v7 = vor.u32 %v2349_v4, %v1997_v3  ;;  %v1917_v8 = vld [vmem:[%s3432_s5 + $0x40] sm:$0xf]  ;;  %v2347_v13 = vld [vmem:[%s3432_s5 + $0xd4] sm:$0xf0] }
  0x34   : > { %v1989_v12 = vld [vmem:[%s3432_s5 + $0xd0] sm:$0xf]  ;;  %v2061_v15 = vld [vmem:[%s3432_s5 + $0x160] sm:$0xf]  ;;  %v2327_v26 = vld [vmem:[%s3432_s5 + $0x34] sm:$0xf0] }
  0x35   : > { %710 = vmatpush.bf16.msra.mxu2 %v1822_v1  ;;  %723 = vmatpush.bf16.msra.mxu3 %v1698_v2  ;;  %v2125_v27 = vld [vmem:[%s3432_s5 + $0x1e0] sm:$0xf]  ;;  %v2053_v33 = vld [vmem:[%s3432_s5 + $0x150] sm:$0xf]  ;;  %v2379_v41 = vld [vmem:[%s3432_s5 + $0x1d4] sm:$0xf0] }
  0x36   : > { %743 = vmatpush.bf16.msrb.mxu1 %v1874_v47  ;;  %v1901_v37 = vld [vmem:[%s3432_s5 + $0x20] sm:$0xf]  ;;  %v2117_v40 = vld [vmem:[%s3432_s5 + $0x1d0] sm:$0xf]  ;;  %v2377_v50 = vld [vmem:[%s3432_s5 + $0x1c4] sm:$0xf0] }
  0x37   : > { %731 = vmatpush.bf16.msrb.mxu0 %v1802_v57  ;;  %v2109_v49 = vld [vmem:[%s3432_s5 + $0x1c0] sm:$0xf]  ;;  %v2359_v54 = vld [vmem:[%s3432_s5 + $0x134] sm:$0xf0]  ;;  %v2021_v60 = vld [vmem:[%s3432_s5 + $0x110] sm:$0xf] }
  0x38   : > { %v2110_v55 = vor.u32 %v2377_v50, %v2109_v49  ;;  %v2343_v3 = vld [vmem:[%s3432_s5 + $0xb4] sm:$0xf0]  ;;  %v2197_v4 = vld [vmem:[%s3432_s5 + $0x270] sm:$0xf]  ;;  %v2077_v49 = vld [vmem:[%s3432_s5 + $0x180] sm:$0xf] }
  0x39   : > { %1428 = vmatpush.bf16.msrb.mxu2 %v1942_v53  ;;  %v2037_v53 = vld [vmem:[%s3432_s5 + $0x130] sm:$0xf]  ;;  %v2369_v50 = vld [vmem:[%s3432_s5 + $0x184] sm:$0xf0] }
  0x3a   : > { %744 = vmatpush.bf16.msrb.mxu1 %v1866_v61  ;;  %v2005_v61 = vld [vmem:[%s3432_s5 + $0xf0] sm:$0xf] }
  0x3b   : > { %732 = vmatpush.bf16.msrb.mxu0 %v1794_v6  ;;  %v2006_v63 = vor.u32 %v2351_v62, %v2005_v61  ;;  %v2367_v6 = vld [vmem:[%s3432_s5 + $0x174] sm:$0xf0] }
  0x3c   : > { %v2355_v61 = vld [vmem:[%s3432_s5 + $0x114] sm:$0xf0] }
  0x3d   : > { %1429 = vmatpush.bf16.msrb.mxu2 %v1934_v58  ;;  %1441 = vmatpush.bf16.msrb.mxu3 %v2006_v63  ;;  %v2357_v58 = vld [vmem:[%s3432_s5 + $0x124] sm:$0xf0]  ;;  %v2022_v62 = vor.u32 %v2355_v61, %v2021_v60  ;;  %v1885_v63 = vld [vmem:[%s3432_s5] sm:$0xf]  ;;  %v2391_v60 = vld [vmem:[%s3432_s5 + $0x234] sm:$0xf0] }
  0x3e   : > { %745 = vmatpush.bf16.msrb.mxu1 %v1858_v9  ;;  %v2329_v9 = vld [vmem:[%s3432_s5 + $0x44] sm:$0xf0]  ;;  %v2253_v61 = vld [vmem:[%s3432_s5 + $0x2e0] sm:$0xf] }
  0x3f   : > { %733 = vmatpush.bf16.msrb.mxu0 %v1786_v16  ;;  %v1918_v21 = vor.u32 %v2329_v9, %v1917_v8  ;;  %v2013_v8 = vld [vmem:[%s3432_s5 + $0x100] sm:$0xf]  ;;  %v2353_v9 = vld [vmem:[%s3432_s5 + $0x104] sm:$0xf0] }
  0x41   : > { %1430 = vmatpush.bf16.msrb.mxu2 %v1926_v0  ;;  %1442 = vmatpush.bf16.msrb.mxu3 %v1998_v7  ;;  %v2321_v0 = vld [vmem:[%s3432_s5 + $0x4] sm:$0xf0] }
  0x42   : > { %746 = vmatpush.bf16.msrb.mxu1 %v1850_v20  ;;  %v2365_v20 = vld [vmem:[%s3432_s5 + $0x164] sm:$0xf0] }
  0x43   : > { %734 = vmatpush.bf16.msrb.mxu0 %v1778_v30  ;;  %v1981_v30 = vld [vmem:[%s3432_s5 + $0xc0] sm:$0xf]  ;;  %v2062_v32 = vor.u32 %v2365_v20, %v2061_v15 }
  0x44   : > { %v2189_v20 = vld [vmem:[%s3432_s5 + $0x260] sm:$0xf] }
  0x45   : > { %1431 = vmatpush.bf16.msrb.mxu2 %v1918_v21  ;;  %v2397_v21 = vld [vmem:[%s3432_s5 + $0x264] sm:$0xf0] }
  0x46   : > { %747 = vmatpush.bf16.msrb.mxu1 %v1842_v31  ;;  %v2345_v31 = vld [vmem:[%s3432_s5 + $0xc4] sm:$0xf0] }
  0x47   : > { %735 = vmatpush.bf16.msrb.mxu0 %v1770_v35  ;;  %v2363_v35 = vld [vmem:[%s3432_s5 + $0x154] sm:$0xf0] }
  0x48   : > { %v2054_v42 = vor.u32 %v2363_v35, %v2053_v33  ;;  %v2395_v33 = vld [vmem:[%s3432_s5 + $0x254] sm:$0xf0]  ;;  %v2085_v35 = vld [vmem:[%s3432_s5 + $0x190] sm:$0xf] }
  0x4a   : > { %748 = vmatpush.bf16.msrb.mxu1 %v1834_v36 }
  0x4b   : > { %736 = vmatpush.bf16.msrb.mxu0 %v1762_v43  ;;  %v2045_v43 = vld [vmem:[%s3432_s5 + $0x140] sm:$0xf] }
  0x4e   : > { %749 = vmatpush.bf16.msrb.mxu1 %v1826_v44 }
  0x97   : > { %v324_v18 = vpop.f32.mrf.mxu2  ;;  %v337_v19 = vpop.f32.mrf.mxu3 }
  0x98   : > { %v325_v24 = vadd.f32 %v324_v18, %v290_v10  ;;  %v338_v25 = vadd.f32 %v337_v19, %v291_v11  ;;  %v2133_v10 = vld [vmem:[%s3432_s5 + $0x1f0] sm:$0xf]  ;;  %v2383_v11 = vld [vmem:[%s3432_s5 + $0x1f4] sm:$0xf0]  ;;  %v2070_v19 = vor.u32 %v2367_v6, %v2069_v5 }
  0x99   : > { %v2399_v5 = vld [vmem:[%s3432_s5 + $0x274] sm:$0xf0] }
  0x9a   : > { %v367_v28 = vmax.f32 %v325_v24, 0.0  ;;  %v368_v29 = vmax.f32 %v338_v25, 0.0  ;;  %v2134_v24 = vor.u32 %v2383_v11, %v2133_v10  ;;  %v1909_v25 = vld [vmem:[%s3432_s5 + $0x30] sm:$0xf]  ;;  %v2198_v7 = vor.u32 %v2399_v5, %v2197_v4  ;;  %v1999_v5 = vld [vmem:[%s3432_s5 + $0xe8] sm:$0xf0] }
  0x9b   : > { %v1910_v34 = vor.u32 %v2327_v26, %v1909_v25  ;;  %v2101_v10 = vld [vmem:[%s3432_s5 + $0x1b0] sm:$0xf]  ;;  %v2014_v11 = vor.u32 %v2353_v9, %v2013_v8  ;;  %v2332_v26 = vld [vmem:[%s3432_s5 + $0x64] sm:$0xf]  ;;  %v2389_v8 = vld [vmem:[%s3432_s5 + $0x224] sm:$0xf0] }
  0x9c   : > { %373 = vst [vmem:[#allocation2 + $0x1] sm:$0x1] %v367_v28  ;;  %v1990_v28 = vor.u32 %v2347_v13, %v1989_v12  ;;  %v2375_v12 = vld [vmem:[%s3432_s5 + $0x1b4] sm:$0xf0]  ;;  %v2334_v13 = vld [vmem:[%s3432_s5 + $0x74] sm:$0xf] }
  0x9d   : > { %374 = vst [vmem:[#allocation2 + $0x2] sm:$0x1] %v368_v29  ;;  %v2381_v29 = vld [vmem:[%s3432_s5 + $0x1e4] sm:$0xf0]  ;;  %1432 = vmatpush.bf16.msrb.mxu2 %v1910_v34  ;;  %v2102_v15 = vor.u32 %v2375_v12, %v2101_v10  ;;  %v2245_v9 = vld [vmem:[%s3432_s5 + $0x2d0] sm:$0xf] }
  0x9e   : > { %v2126_v36 = vor.u32 %v2381_v29, %v2125_v27  ;;  %1443 = vmatpush.bf16.msrb.mxu3 %v1990_v28  ;;  %v1935_v27 = vld [vmem:[%s3432_s5 + $0x68] sm:$0xf0]  ;;  %v1957_v29 = vld [vmem:[%s3432_s5 + $0x90] sm:$0xf] }
  0x9f   : > { %v326_v38 = vpop.f32.mrf.mxu2  ;;  %v339_v39 = vpop.f32.mrf.mxu3  ;;  %v1938_v28 = vor.u32 %v2332_v26, %v1935_v27  ;;  %v1895_v26 = vld [vmem:[%s3432_s5 + $0x18] sm:$0xf0]  ;;  %v2344_v27 = vld [vmem:[%s3432_s5 + $0xc4] sm:$0xf] }
  0xa0   : > { %v2325_v38 = vld [vmem:[%s3432_s5 + $0x24] sm:$0xf0]  ;;  %v1982_v39 = vor.u32 %v2345_v31, %v1981_v30  ;;  %v2339_v30 = vld [vmem:[%s3432_s5 + $0x94] sm:$0xf0] }
  0xa1   : > { %v1902_v44 = vor.u32 %v2325_v38, %v1901_v37  ;;  %v1958_v31 = vor.u32 %v2339_v30, %v1957_v29  ;;  %v2330_v38 = vld [vmem:[%s3432_s5 + $0x54] sm:$0xf]  ;;  %v1983_v30 = vld [vmem:[%s3432_s5 + $0xc8] sm:$0xf0] }
  0xa2   : > { %1444 = vmatpush.bf16.msrb.mxu3 %v1982_v39  ;;  %v1927_v39 = vld [vmem:[%s3432_s5 + $0x58] sm:$0xf0] }
  0xa3   : > { %1433 = vmatpush.bf16.msrb.mxu2 %v1902_v44  ;;  %v2173_v44 = vld [vmem:[%s3432_s5 + $0x240] sm:$0xf] }
  0xa7   : > { %v350_v47 = vpop.f32.mrf.mxu2  ;;  %v363_v48 = vpop.f32.mrf.mxu3 }
  0xa8   : > { %v351_v51 = vadd.f32 %v350_v47, %v292_v45  ;;  %v364_v52 = vadd.f32 %v363_v48, %v293_v46  ;;  %v2361_v45 = vld [vmem:[%s3432_s5 + $0x144] sm:$0xf0]  ;;  %v2118_v46 = vor.u32 %v2379_v41, %v2117_v40  ;;  %v1893_v47 = vld [vmem:[%s3432_s5 + $0x10] sm:$0xf]  ;;  %v2323_v48 = vld [vmem:[%s3432_s5 + $0x14] sm:$0xf0]  ;;  %v1930_v40 = vor.u32 %v2330_v38, %v1927_v39 }
  0xa9   : > { %v1949_v41 = vld [vmem:[%s3432_s5 + $0x80] sm:$0xf]  ;;  %v2320_v38 = vld [vmem:[%s3432_s5 + $0x4] sm:$0xf]  ;;  %v1887_v39 = vld [vmem:[%s3432_s5 + $0x8] sm:$0xf0] }
  0xaa   : > { %v369_v56 = vmax.f32 %v351_v51, 0.0  ;;  %v370_v57 = vmax.f32 %v364_v52, 0.0  ;;  %v2046_v51 = vor.u32 %v2361_v45, %v2045_v43  ;;  %v1894_v52 = vor.u32 %v2323_v48, %v1893_v47  ;;  %v2393_v45 = vld [vmem:[%s3432_s5 + $0x244] sm:$0xf0]  ;;  %v2415_v48 = vld [vmem:[%s3432_s5 + $0x2f4] sm:$0xf0] }
  0xab   : > { %v2174_v47 = vor.u32 %v2393_v45, %v2173_v44  ;;  %v2221_v45 = vld [vmem:[%s3432_s5 + $0x2a0] sm:$0xf] }
  0xac   : > { %375 = vst [vmem:[#allocation2 + $0x3] sm:$0x1] %v369_v56  ;;  %v2038_v56 = vor.u32 %v2359_v54, %v2037_v53  ;;  %1434 = vmatpush.bf16.msrb.mxu2 %v1894_v52  ;;  %v2078_v52 = vor.u32 %v2369_v50, %v2077_v49  ;;  %v2328_v53 = vld [vmem:[%s3432_s5 + $0x44] sm:$0xf]  ;;  %v1919_v54 = vld [vmem:[%s3432_s5 + $0x48] sm:$0xf0] }
  0xad   : > { %376 = vst [vmem:[#allocation2 + $0x4] sm:$0x1] %v370_v57  ;;  %v2029_v57 = vld [vmem:[%s3432_s5 + $0x120] sm:$0xf]  ;;  %v2340_v50 = vld [vmem:[%s3432_s5 + $0xa4] sm:$0xf] }
  0xae   : > { %v2030_v59 = vor.u32 %v2357_v58, %v2029_v57  ;;  %v2007_v57 = vld [vmem:[%s3432_s5 + $0xf8] sm:$0xf0] }
  0xaf   : > { %v352_v1 = vpop.f32.mrf.mxu2  ;;  %v365_v2 = vpop.f32.mrf.mxu3 }
  0xb0   : > { %v1973_v1 = vld [vmem:[%s3432_s5 + $0xb0] sm:$0xf]  ;;  %v1886_v2 = vor.u32 %v2321_v0, %v1885_v63  ;;  %v2413_v63 = vld [vmem:[%s3432_s5 + $0x2e4] sm:$0xf0] }
  0xb1   : > { %v1974_v6 = vor.u32 %v2343_v3, %v1973_v1  ;;  %v2254_v0 = vor.u32 %v2413_v63, %v2253_v61  ;;  %v2326_v1 = vld [vmem:[%s3432_s5 + $0x34] sm:$0xf]  ;;  %v2348_v3 = vld [vmem:[%s3432_s5 + $0xe4] sm:$0xf]  ;;  %v2205_v63 = vld [vmem:[%s3432_s5 + $0x280] sm:$0xf] }
  0xb2   : > { %1435 = vmatpush.bf16.msrb.mxu2 %v1886_v2  ;;  %v1911_v2 = vld [vmem:[%s3432_s5 + $0x38] sm:$0xf0] }
  0xb3   : > { %v377_v14 = vld [vmem:[#allocation2] sm:$0xf]  ;;  %1445 = vmatpush.bf16.msrb.mxu3 %v1974_v6  ;;  %v1914_v4 = vor.u32 %v2326_v1, %v1911_v2  ;;  %v2002_v6 = vor.u32 %v2348_v3, %v1999_v5  ;;  %v2336_v5 = vld [vmem:[%s3432_s5 + $0x84] sm:$0xf] }
  0xb4   : > { %v380_v16 = vpack.c.bf16 %v377_v14, %v377_v14  ;;  %v378_v17 = vld [vmem:[#allocation2 + $0x1] sm:$0xf]  ;;  %v1943_v14 = vld [vmem:[%s3432_s5 + $0x78] sm:$0xf0] }
  0xb5   : > { %v379_v18 = vld [vmem:[#allocation2 + $0x2] sm:$0xf]  ;;  %v381_v22 = vpack.c.bf16 %v378_v17, %v378_v17 }
  0xb6   : > { %v382_v23 = vpack.c.bf16 %v379_v18, %v379_v18  ;;  %685 = vmatmul.bf16.vlgmr.msra.gmra.mxu0 %v380_v16  ;;  %724 = vmatmul.bf16.vlgmr.msra.gmra.mxu3 %v380_v16  ;;  %v1946_v16 = vor.u32 %v2334_v13, %v1943_v14  ;;  %v1965_v17 = vld [vmem:[%s3432_s5 + $0xa0] sm:$0xf]  ;;  %v2341_v18 = vld [vmem:[%s3432_s5 + $0xa4] sm:$0xf0]  ;;  %v2324_v13 = vld [vmem:[%s3432_s5 + $0x24] sm:$0xf] }
  0xb7   : > { %698 = vmatmul.bf16.vlgmr.msra.gmra.mxu1 %v381_v22  ;;  %1454 = vmatpush.bf16.msra.mxu0 %v2070_v19  ;;  %v1966_v19 = vor.u32 %v2341_v18, %v1965_v17  ;;  %v1903_v14 = vld [vmem:[%s3432_s5 + $0x28] sm:$0xf0]  ;;  %v1991_v17 = vld [vmem:[%s3432_s5 + $0xd8] sm:$0xf0] }
  0xb8   : > { %711 = vmatmul.bf16.vlgmr.msra.gmra.mxu2 %v382_v23  ;;  %1467 = vmatpush.bf16.msra.mxu1 %v2134_v24  ;;  %v2373_v24 = vld [vmem:[%s3432_s5 + $0x1a4] sm:$0xf0] }
  0xb9   : > { %1480 = vmatpush.bf16.msra.mxu2 %v2198_v7  ;;  %1446 = vmatpush.bf16.msrb.mxu3 %v1966_v19  ;;  %v2157_v7 = vld [vmem:[%s3432_s5 + $0x220] sm:$0xf]  ;;  %v2149_v19 = vld [vmem:[%s3432_s5 + $0x210] sm:$0xf] }
  0xba   : > { %v2158_v10 = vor.u32 %v2389_v8, %v2157_v7 }
  0xbb   : > { %1455 = vmatpush.bf16.msra.mxu0 %v2062_v32  ;;  %v2181_v32 = vld [vmem:[%s3432_s5 + $0x250] sm:$0xf] }
  0xbc   : > { %1468 = vmatpush.bf16.msra.mxu1 %v2126_v36  ;;  %v2182_v34 = vor.u32 %v2395_v33, %v2181_v32  ;;  %v2371_v36 = vld [vmem:[%s3432_s5 + $0x194] sm:$0xf0]  ;;  %v2141_v32 = vld [vmem:[%s3432_s5 + $0x200] sm:$0xf]  ;;  %v2385_v33 = vld [vmem:[%s3432_s5 + $0x204] sm:$0xf0] }
  0xbd   : > { %v2086_v37 = vor.u32 %v2371_v36, %v2085_v35  ;;  %1447 = vmatpush.bf16.msrb.mxu3 %v1958_v31  ;;  %v1986_v31 = vor.u32 %v2344_v27, %v1983_v30  ;;  %v2142_v35 = vor.u32 %v2385_v33, %v2141_v32  ;;  %v2407_v36 = vld [vmem:[%s3432_s5 + $0x2b4] sm:$0xf0]  ;;  %v2071_v27 = vld [vmem:[%s3432_s5 + $0x178] sm:$0xf0]  ;;  %v2398_v30 = vld [vmem:[%s3432_s5 + $0x274] sm:$0xf] }
  0xbf   : > { %1456 = vmatpush.bf16.msra.mxu0 %v2054_v42  ;;  %v2337_v42 = vld [vmem:[%s3432_s5 + $0x84] sm:$0xf0] }
  0xc0   : > { %1469 = vmatpush.bf16.msra.mxu1 %v2118_v46  ;;  %v1950_v43 = vor.u32 %v2337_v42, %v1949_v41  ;;  %v2261_v46 = vld [vmem:[%s3432_s5 + $0x2f0] sm:$0xf]  ;;  %v1890_v42 = vor.u32 %v2320_v38, %v1887_v39 }
  0xc2   : > { %1448 = vmatpush.bf16.msrb.mxu3 %v1950_v43  ;;  %v1975_v43 = vld [vmem:[%s3432_s5 + $0xb8] sm:$0xf0] }
  0xc3   : > { %1457 = vmatpush.bf16.msra.mxu0 %v2046_v51  ;;  %v2262_v51 = vor.u32 %v2415_v48, %v2261_v46  ;;  %v2405_v46 = vld [vmem:[%s3432_s5 + $0x2a4] sm:$0xf0] }
  0xc4   : > { %1470 = vmatpush.bf16.msra.mxu1 %v2110_v55  ;;  %v2350_v55 = vld [vmem:[%s3432_s5 + $0xf4] sm:$0xf]  ;;  %v2222_v48 = vor.u32 %v2405_v46, %v2221_v45  ;;  %v2396_v45 = vld [vmem:[%s3432_s5 + $0x264] sm:$0xf]  ;;  %v2191_v46 = vld [vmem:[%s3432_s5 + $0x268] sm:$0xf0] }
  0xc5   : > { %v2010_v58 = vor.u32 %v2350_v55, %v2007_v57  ;;  %v2403_v55 = vld [vmem:[%s3432_s5 + $0x294] sm:$0xf0]  ;;  %v2338_v57 = vld [vmem:[%s3432_s5 + $0x94] sm:$0xf] }
  0xc6   : > { %737 = vmatmul.bf16.vlgmr.msrb.gmra.mxu0 %v381_v22  ;;  %v2190_v22 = vor.u32 %v2397_v21, %v2189_v20  ;;  %1493 = vmatpush.bf16.msra.mxu3 %v2262_v51  ;;  %v2387_v20 = vld [vmem:[%s3432_s5 + $0x214] sm:$0xf0]  ;;  %v2237_v21 = vld [vmem:[%s3432_s5 + $0x2c0] sm:$0xf]  ;;  %v1967_v51 = vld [vmem:[%s3432_s5 + $0xa8] sm:$0xf0] }
  0xc7   : > { %750 = vmatmul.bf16.vlgmr.msrb.gmra.mxu1 %v382_v23  ;;  %1458 = vmatpush.bf16.msra.mxu0 %v2038_v56  ;;  %v2093_v23 = vld [vmem:[%s3432_s5 + $0x1a0] sm:$0xf]  ;;  %v1922_v56 = vor.u32 %v2328_v53, %v1919_v54  ;;  %v1970_v53 = vor.u32 %v2340_v50, %v1967_v51  ;;  %v2213_v54 = vld [vmem:[%s3432_s5 + $0x290] sm:$0xf] }
  0xc8   : > { %1471 = vmatpush.bf16.msra.mxu1 %v2102_v15  ;;  %v2094_v25 = vor.u32 %v2373_v24, %v2093_v23  ;;  %1481 = vmatpush.bf16.msra.mxu2 %v2190_v22  ;;  %v2346_v15 = vld [vmem:[%s3432_s5 + $0xd4] sm:$0xf]  ;;  %v2150_v22 = vor.u32 %v2387_v20, %v2149_v19  ;;  %v2409_v23 = vld [vmem:[%s3432_s5 + $0x2c4] sm:$0xf0] }
  0xc9   : > { %v1994_v18 = vor.u32 %v2346_v15, %v1991_v17  ;;  %v2238_v24 = vor.u32 %v2409_v23, %v2237_v21 }
  0xca   : > { %1494 = vmatpush.bf16.msra.mxu3 %v2254_v0  ;;  %v2401_v0 = vld [vmem:[%s3432_s5 + $0x284] sm:$0xf0] }
  0xcb   : > { %1459 = vmatpush.bf16.msra.mxu0 %v2030_v59  ;;  %v2165_v59 = vld [vmem:[%s3432_s5 + $0x230] sm:$0xf]  ;;  %v2206_v3 = vor.u32 %v2401_v0, %v2205_v63  ;;  %v2135_v63 = vld [vmem:[%s3432_s5 + $0x1f8] sm:$0xf0] }
  0xcc   : > { %1472 = vmatpush.bf16.msra.mxu1 %v2094_v25  ;;  %1482 = vmatpush.bf16.msra.mxu2 %v2182_v34  ;;  %v2322_v25 = vld [vmem:[%s3432_s5 + $0x14] sm:$0xf]  ;;  %v2229_v34 = vld [vmem:[%s3432_s5 + $0x2b0] sm:$0xf] }
  0xcd   : > { %v1898_v29 = vor.u32 %v2322_v25, %v1895_v26  ;;  %v2366_v26 = vld [vmem:[%s3432_s5 + $0x174] sm:$0xf] }
  0xcf   : > { %1460 = vmatpush.bf16.msra.mxu0 %v2022_v62  ;;  %v2166_v62 = vor.u32 %v2391_v60, %v2165_v59 }
  0xd0   : > { %1473 = vmatpush.bf16.msra.mxu1 %v2086_v37  ;;  %1483 = vmatpush.bf16.msra.mxu2 %v2174_v47  ;;  %v2230_v37 = vor.u32 %v2407_v36, %v2229_v34  ;;  %v2074_v36 = vor.u32 %v2366_v26, %v2071_v27  ;;  %v2255_v26 = vld [vmem:[%s3432_s5 + $0x2e8] sm:$0xf0] }
  0xd3   : > { %1461 = vmatpush.bf16.msra.mxu0 %v2014_v11  ;;  %v2411_v11 = vld [vmem:[%s3432_s5 + $0x2d4] sm:$0xf0] }
  0xd4   : > { %1474 = vmatpush.bf16.msra.mxu1 %v2078_v52  ;;  %1484 = vmatpush.bf16.msra.mxu2 %v2166_v62  ;;  %v2246_v12 = vor.u32 %v2411_v11, %v2245_v9 }
  0xd6   : > { %1495 = vmatpush.bf16.msra.mxu3 %v2246_v12 }
  0xd7   : > { %1506 = vmatpush.bf16.msrb.mxu0 %v1946_v16  ;;  %v1906_v16 = vor.u32 %v2324_v13, %v1903_v14 }
  0xd8   : > { %1519 = vmatpush.bf16.msrb.mxu1 %v2010_v58  ;;  %1485 = vmatpush.bf16.msra.mxu2 %v2158_v10  ;;  %v1959_v58 = vld [vmem:[%s3432_s5 + $0x98] sm:$0xf0] }
  0xd9   : > { %v1962_v61 = vor.u32 %v2338_v57, %v1959_v58  ;;  %v2183_v57 = vld [vmem:[%s3432_s5 + $0x258] sm:$0xf0]  ;;  %v2360_v58 = vld [vmem:[%s3432_s5 + $0x144] sm:$0xf] }
  0xda   : > { %1496 = vmatpush.bf16.msra.mxu3 %v2238_v24 }
  0xdb   : > { %1507 = vmatpush.bf16.msrb.mxu0 %v1938_v28  ;;  %v3131_v28 = vld [vmem:[%s3431_s4] sm:$0x3] }
  0xdc   : > { %1520 = vmatpush.bf16.msrb.mxu1 %v2002_v6  ;;  %1486 = vmatpush.bf16.msra.mxu2 %v2150_v22  ;;  %v433_v41 = vperm.slane %v3131_v28, 0  ;;  %v1951_v6 = vld [vmem:[%s3432_s5 + $0x88] sm:$0xf0]  ;;  %v434_v9 = vperm.slane %v3131_v28, 1 }
  0xdd   : > { %v1954_v8 = vor.u32 %v2336_v5, %v1951_v6 }
  0xde   : > { %1497 = vmatpush.bf16.msra.mxu3 %v2230_v37  ;;  %v2364_v37 = vld [vmem:[%s3432_s5 + $0x164] sm:$0xf] }
  0xdf   : > { %1508 = vmatpush.bf16.msrb.mxu0 %v1930_v40  ;;  %v2342_v40 = vld [vmem:[%s3432_s5 + $0xb4] sm:$0xf] }
  0xe0   : > { %1521 = vmatpush.bf16.msrb.mxu1 %v1994_v18  ;;  %1487 = vmatpush.bf16.msra.mxu2 %v2142_v35  ;;  %v1978_v44 = vor.u32 %v2342_v40, %v1975_v43  ;;  %v2199_v35 = vld [vmem:[%s3432_s5 + $0x278] sm:$0xf0] }
  0xe1   : > { %v2202_v43 = vor.u32 %v2398_v30, %v2199_v35  ;;  %v2167_v30 = vld [vmem:[%s3432_s5 + $0x238] sm:$0xf0] }
  0xe2   : > { %1498 = vmatpush.bf16.msra.mxu3 %v2222_v48  ;;  %v2362_v48 = vld [vmem:[%s3432_s5 + $0x154] sm:$0xf] }
  0xe3   : > { %1509 = vmatpush.bf16.msrb.mxu0 %v1922_v56  ;;  %v2214_v56 = vor.u32 %v2403_v55, %v2213_v54  ;;  %v2394_v54 = vld [vmem:[%s3432_s5 + $0x254] sm:$0xf] }
  0xe4   : > { %1522 = vmatpush.bf16.msrb.mxu1 %v1986_v31 }
  0xe6   : > { %1499 = vmatpush.bf16.msra.mxu3 %v2214_v56 }
  0xe7   : > { %1510 = vmatpush.bf16.msrb.mxu0 %v1914_v4 }
  0xe8   : > { %1523 = vmatpush.bf16.msrb.mxu1 %v1978_v44 }
  0xea   : > { %1500 = vmatpush.bf16.msra.mxu3 %v2206_v3 }
  0xeb   : > { %1511 = vmatpush.bf16.msrb.mxu0 %v1906_v16 }
  0xec   : > { %1524 = vmatpush.bf16.msrb.mxu1 %v1970_v53  ;;  %v2194_v53 = vor.u32 %v2396_v45, %v2191_v46  ;;  %v2388_v45 = vld [vmem:[%s3432_s5 + $0x224] sm:$0xf]  ;;  %v2159_v46 = vld [vmem:[%s3432_s5 + $0x228] sm:$0xf0] }
  0xef   : > { %1512 = vmatpush.bf16.msrb.mxu0 %v1898_v29 }
  0xf0   : > { %1525 = vmatpush.bf16.msrb.mxu1 %v1962_v61 }
  0xf3   : > { %1513 = vmatpush.bf16.msrb.mxu0 %v1890_v42 }
  0xf4   : > { %1526 = vmatpush.bf16.msrb.mxu1 %v1954_v8  ;;  %v2263_v8 = vld [vmem:[%s3432_s5 + $0x2f8] sm:$0xf0] }
 0x133   : > { %v686_v47 = vpop.f32.mrf.mxu0 }
 0x134   : > { %v699_v49 = vpop.f32.mrf.mxu1  ;;  %v687_v52 = vadd.f32 %v686_v47, %v433_v41  ;;  %v2063_v41 = vld [vmem:[%s3432_s5 + $0x168] sm:$0xf0] }
 0x135   : > { %v2066_v47 = vor.u32 %v2364_v37, %v2063_v41  ;;  %v2356_v37 = vld [vmem:[%s3432_s5 + $0x124] sm:$0xf]  ;;  %v2410_v41 = vld [vmem:[%s3432_s5 + $0x2d4] sm:$0xf] }
 0x136   : > { %v700_v59 = vadd.f32 %v699_v49, %v687_v52  ;;  %v2055_v49 = vld [vmem:[%s3432_s5 + $0x158] sm:$0xf0] }
 0x139   : > { %v725_v60 = vpop.f32.mrf.mxu3 }
 0x13a   : > { %v726_v12 = vadd.f32 %v725_v60, %v434_v9  ;;  %v2058_v60 = vor.u32 %v2362_v48, %v2055_v49  ;;  %v2376_v48 = vld [vmem:[%s3432_s5 + $0x1c4] sm:$0xf]  ;;  %v2111_v49 = vld [vmem:[%s3432_s5 + $0x1c8] sm:$0xf0] }
 0x13b   : > { %v712_v62 = vpop.f32.mrf.mxu2  ;;  %v688_v2 = vpop.f32.mrf.mxu0 }
 0x13c   : > { %v713_v1 = vadd.f32 %v712_v62, %v700_v59  ;;  %v701_v4 = vpop.f32.mrf.mxu1  ;;  %v2047_v59 = vld [vmem:[%s3432_s5 + $0x148] sm:$0xf0]  ;;  %v2382_v62 = vld [vmem:[%s3432_s5 + $0x1f4] sm:$0xf] }
 0x13d   : > { %v2186_v4 = vor.u32 %v2394_v54, %v2183_v57  ;;  %v2050_v9 = vor.u32 %v2360_v58, %v2047_v59  ;;  %v2162_v54 = vor.u32 %v2388_v45, %v2159_v46  ;;  %v2386_v57 = vld [vmem:[%s3432_s5 + $0x214] sm:$0xf]  ;;  %v2151_v58 = vld [vmem:[%s3432_s5 + $0x218] sm:$0xf0] }
 0x13e   : > { %v755_v7 = vmax.f32 %v713_v1, 0.0  ;;  %v2414_v1 = vld [vmem:[%s3432_s5 + $0x2f4] sm:$0xf] }
 0x140   : > { %v768_v10 = vrot.slane %v755_v7, 7 }
 0x141   : > { %v727_v11 = vpop.f32.mrf.mxu3 }
 0x142   : > { %772 = vst [vmem:[#allocation3] sm:$0x1e] %v768_v10  ;;  %v2138_v10 = vor.u32 %v2382_v62, %v2135_v63  ;;  %v2392_v11 = vld [vmem:[%s3432_s5 + $0x244] sm:$0xf]  ;;  %v2103_v62 = vld [vmem:[%s3432_s5 + $0x1b8] sm:$0xf0] }
 0x143   : > { %v714_v13 = vpop.f32.mrf.mxu2  ;;  %v738_v14 = vpop.f32.mrf.mxu0 }
 0x144   : > { %v739_v15 = vadd.f32 %v738_v14, %v726_v12  ;;  %v751_v16 = vpop.f32.mrf.mxu1  ;;  %v2175_v12 = vld [vmem:[%s3432_s5 + $0x248] sm:$0xf0]  ;;  %v2380_v13 = vld [vmem:[%s3432_s5 + $0x1e4] sm:$0xf] }
 0x146   : > { %v752_v17 = vadd.f32 %v751_v16, %v739_v15 }
 0x148   : > { %v756_v18 = vmax.f32 %v752_v17, 0.0  ;;  %v2127_v17 = vld [vmem:[%s3432_s5 + $0x1e8] sm:$0xf0] }
 0x149   : > { %v774_v19 = vld [vmem:[#allocation3] sm:$0x1e] }
 0x14a   : > { %v776_v20 = vld [vmem:[#allocation3] sm:$0xf]  ;;  %v792_v21 = vpack.c.bf16 %v774_v19, %v774_v19  ;;  %v769_v23 = vrot.slane %v756_v18, 7  ;;  %v2266_v19 = vor.u32 %v2414_v1, %v2263_v8  ;;  %v2015_v1 = vld [vmem:[%s3432_s5 + $0x108] sm:$0xf0] }
 0x14b   : > { %v782_v22 = vrot.slane %v776_v20, 7  ;;  %v740_v24 = vpop.f32.mrf.mxu0  ;;  %v778_v31 = vld [vmem:[#allocation3] sm:$0x3c] }
 0x14c   : > { %v903_v25 = vshll.u32 %v792_v21, 16  ;;  %773 = vst [vmem:[#allocation3 + $0x8] sm:$0x1e] %v769_v23  ;;  %v753_v29 = vpop.f32.mrf.mxu1  ;;  %v901_v32 = vshrl.u32 %v792_v21, 16  ;;  %v788_v42 = vrot.slane %v778_v31, 1  ;;  %v2178_v24 = vor.u32 %v2392_v11, %v2175_v12 }
 0x14d   : > { %v794_v28 = vpack.c.bf16 %v782_v22, %v782_v22  ;;  %v2358_v21 = vld [vmem:[%s3432_s5 + $0x134] sm:$0xf]  ;;  %v2039_v22 = vld [vmem:[%s3432_s5 + $0x138] sm:$0xf0]  ;;  %v2143_v8 = vld [vmem:[%s3432_s5 + $0x208] sm:$0xf0] }
 0x14e   : > { %v905_v33 = vrot.slane %v903_v25, 1  ;;  %v796_v52 = vpack.c.bf16 %v788_v42, %v788_v42  ;;  %v2412_v25 = vld [vmem:[%s3432_s5 + $0x2e4] sm:$0xf]  ;;  %v2390_v29 = vld [vmem:[%s3432_s5 + $0x234] sm:$0xf]  ;;  %v2042_v31 = vor.u32 %v2358_v21, %v2039_v22 }
 0x14f   : > { %v917_v34 = vshll.u32 %v794_v28, 16  ;;  %v915_v39 = vshrl.u32 %v794_v28, 16  ;;  %v2130_v28 = vor.u32 %v2380_v13, %v2127_v17  ;;  %v2247_v42 = vld [vmem:[%s3432_s5 + $0x2d8] sm:$0xf0]  ;;  %v2372_v11 = vld [vmem:[%s3432_s5 + $0x1a4] sm:$0xf] }
 0x150   : > { %v3213_v38 = vor.u32 %v905_v33, %v901_v32  ;;  %v931_v2 = vshll.u32 %v796_v52, 16  ;;  %v929_v27 = vshrl.u32 %v796_v52, 16  ;;  %v2378_v32 = vld [vmem:[%s3432_s5 + $0x1d4] sm:$0xf]  ;;  %v2119_v33 = vld [vmem:[%s3432_s5 + $0x1d8] sm:$0xf0] }
 0x151   : > { %v919_v40 = vrot.slane %v917_v34, 1  ;;  %v2354_v52 = vld [vmem:[%s3432_s5 + $0x114] sm:$0xf]  ;;  %v2095_v12 = vld [vmem:[%s3432_s5 + $0x1a8] sm:$0xf0] }
 0x152   : > { %1436 = vmatmul.bf16.vlgmr.msrb.gmra.mxu2 %v3213_v38  ;;  %v933_v20 = vrot.slane %v931_v2, 1  ;;  %v2154_v2 = vor.u32 %v2386_v57, %v2151_v58  ;;  %v2223_v17 = vld [vmem:[%s3432_s5 + $0x2a8] sm:$0xf0]  ;;  %v2402_v22 = vld [vmem:[%s3432_s5 + $0x294] sm:$0xf] }
 0x153   : > { %v3219_v44 = vor.u32 %v919_v40, %v915_v39  ;;  %1532 = vmatpush.bf16.msrb.mxu2 %v2074_v36  ;;  %v775_v50 = vld [vmem:[#allocation3 + $0x8] sm:$0x1e]  ;;  %v2258_v36 = vor.u32 %v2412_v25, %v2255_v26  ;;  %v2031_v39 = vld [vmem:[%s3432_s5 + $0x128] sm:$0xf0]  ;;  %v2170_v40 = vor.u32 %v2390_v29, %v2167_v30  ;;  %v2368_v25 = vld [vmem:[%s3432_s5 + $0x184] sm:$0xf] }
 0x154   : > { %v777_v51 = vld [vmem:[#allocation3 + $0x8] sm:$0xf]  ;;  %v793_v55 = vpack.c.bf16 %v775_v50, %v775_v50  ;;  %v3300_v35 = vor.u32 %v933_v20, %v929_v27  ;;  %v2087_v20 = vld [vmem:[%s3432_s5 + $0x198] sm:$0xf0]  ;;  %v2079_v26 = vld [vmem:[%s3432_s5 + $0x188] sm:$0xf0] }
 0x155   : > { %1462 = vmatmul.bf16.vlgmr.msra.gmra.mxu0 %v3219_v44  ;;  %v783_v56 = vrot.slane %v777_v51, 7  ;;  %v779_v3 = vld [vmem:[#allocation3 + $0x8] sm:$0x3c]  ;;  %v2250_v51 = vor.u32 %v2410_v41, %v2247_v42  ;;  %v2082_v29 = vor.u32 %v2368_v25, %v2079_v26 }
 0x156   : > { %1558 = vmatpush.bf16.msra.mxu0 %v2202_v43  ;;  %v910_v61 = vshll.u32 %v793_v55, 16  ;;  %v908_v5 = vshrl.u32 %v793_v55, 16  ;;  %v789_v18 = vrot.slane %v779_v3, 1  ;;  %v2122_v43 = vor.u32 %v2378_v32, %v2119_v33  ;;  %v2408_v55 = vld [vmem:[%s3432_s5 + $0x2c4] sm:$0xf] }
 0x157   : > { %1533 = vmatpush.bf16.msrb.mxu2 %v2066_v47  ;;  %v795_v0 = vpack.c.bf16 %v783_v56, %v783_v56  ;;  %v2034_v47 = vor.u32 %v2356_v37, %v2031_v39  ;;  %v2114_v56 = vor.u32 %v2376_v48, %v2111_v49 }
 0x158   : > { %v912_v6 = vrot.slane %v910_v61, 1  ;;  %v797_v34 = vpack.c.bf16 %v789_v18, %v789_v18  ;;  %v2374_v61 = vld [vmem:[%s3432_s5 + $0x1b4] sm:$0xf]  ;;  %v2098_v18 = vor.u32 %v2372_v11, %v2095_v12 }
 0x159   : > { %v924_v7 = vshll.u32 %v795_v0, 16  ;;  %v922_v15 = vshrl.u32 %v795_v0, 16  ;;  %v2352_v0 = vld [vmem:[%s3432_s5 + $0x104] sm:$0xf] }
 0x15a   : > { %1559 = vmatpush.bf16.msra.mxu0 %v2194_v53  ;;  %v3267_v14 = vor.u32 %v912_v6, %v908_v5  ;;  %v938_v50 = vshll.u32 %v797_v34, 16  ;;  %v2023_v53 = vld [vmem:[%s3432_s5 + $0x118] sm:$0xf0]  ;;  %v936_v3 = vshrl.u32 %v797_v34, 16  ;;  %v2106_v6 = vor.u32 %v2374_v61, %v2103_v62  ;;  %v894_v34 = vld [vmem:[%s3433_s6] sm:$0x3] }
 0x15b   : > { %1534 = vmatpush.bf16.msrb.mxu2 %v2058_v60  ;;  %v926_v16 = vrot.slane %v924_v7, 1  ;;  %v2026_v59 = vor.u32 %v2354_v52, %v2023_v53  ;;  %v2231_v5 = vld [vmem:[%s3432_s5 + $0x2b8] sm:$0xf0]  ;;  %v2384_v7 = vld [vmem:[%s3432_s5 + $0x204] sm:$0xf]  ;;  %v896_v37 = vperm.slane %v894_v34, 0 }
 0x15c   : > { %1449 = vmatmul.bf16.vlgmr.msrb.gmra.mxu3 %v3267_v14  ;;  %v940_v60 = vrot.slane %v938_v50, 1 }
 0x15d   : > { %v3279_v23 = vor.u32 %v926_v16, %v922_v15  ;;  %1545 = vmatpush.bf16.msrb.mxu3 %v2138_v10  ;;  %v2018_v10 = vor.u32 %v2352_v0, %v2015_v1  ;;  %v2146_v15 = vor.u32 %v2384_v7, %v2143_v8  ;;  %v2404_v16 = vld [vmem:[%s3432_s5 + $0x2a4] sm:$0xf] }
 0x15e   : > { %1560 = vmatpush.bf16.msra.mxu0 %v2186_v4  ;;  %v2406_v4 = vld [vmem:[%s3432_s5 + $0x2b4] sm:$0xf]  ;;  %v2226_v21 = vor.u32 %v2404_v16, %v2223_v17 }
 0x15f   : > { %1535 = vmatpush.bf16.msrb.mxu2 %v2050_v9  ;;  %1475 = vmatmul.bf16.vlgmr.msra.gmra.mxu1 %v3279_v23  ;;  %v941_v9 = vor.u32 %v940_v60, %v936_v3  ;;  %v2234_v13 = vor.u32 %v2406_v4, %v2231_v5 }
 0x160   : > { %1571 = vmatpush.bf16.msra.mxu1 %v2266_v19  ;;  %v2370_v19 = vld [vmem:[%s3432_s5 + $0x194] sm:$0xf] }
 0x161   : > { %1546 = vmatpush.bf16.msrb.mxu3 %v2130_v28  ;;  %v2400_v28 = vld [vmem:[%s3432_s5 + $0x284] sm:$0xf] }
 0x162   : > { %1561 = vmatpush.bf16.msra.mxu0 %v2178_v24  ;;  %1488 = vmatmul.bf16.vlgmr.msra.gmra.mxu2 %v3300_v35  ;;  %v2215_v24 = vld [vmem:[%s3432_s5 + $0x298] sm:$0xf0] }
 0x163   : > { %1536 = vmatpush.bf16.msrb.mxu2 %v2042_v31  ;;  %v2218_v27 = vor.u32 %v2402_v22, %v2215_v24 }
 0x164   : > { %1572 = vmatpush.bf16.msra.mxu1 %v2258_v36 }
 0x165   : > { %1514 = vmatmul.bf16.vlgmr.msrb.gmra.mxu0 %v3213_v38  ;;  %v2239_v38 = vld [vmem:[%s3432_s5 + $0x2c8] sm:$0xf0]  ;;  %1547 = vmatpush.bf16.msrb.mxu3 %v2122_v43 }
 0x166   : > { %1562 = vmatpush.bf16.msra.mxu0 %v2170_v40  ;;  %v2242_v63 = vor.u32 %v2408_v55, %v2239_v38 }
 0x167   : > { %1537 = vmatpush.bf16.msrb.mxu2 %v2034_v47 }
 0x168   : > { %1573 = vmatpush.bf16.msra.mxu1 %v2250_v51 }
 0x169   : > { %1548 = vmatpush.bf16.msrb.mxu3 %v2114_v56  ;;  %v897_v56 = vperm.slane %v894_v34, 1 }
 0x16a   : > { %1563 = vmatpush.bf16.msra.mxu0 %v2162_v54 }
 0x16b   : > { %1538 = vmatpush.bf16.msrb.mxu2 %v2026_v59 }
 0x16c   : > { %1574 = vmatpush.bf16.msra.mxu1 %v2242_v63  ;;  %1501 = vmatmul.bf16.vlgmr.msra.gmra.mxu3 %v941_v9 }
 0x16d   : > { %1549 = vmatpush.bf16.msrb.mxu3 %v2106_v6 }
 0x16e   : > { %1564 = vmatpush.bf16.msra.mxu0 %v2154_v2 }
 0x16f   : > { %1539 = vmatpush.bf16.msrb.mxu2 %v2018_v10  ;;  %1527 = vmatmul.bf16.vlgmr.msrb.gmra.mxu1 %v3267_v14  ;;  %v2090_v14 = vor.u32 %v2370_v19, %v2087_v20 }
 0x170   : > { %1575 = vmatpush.bf16.msra.mxu1 %v2234_v13 }
 0x171   : > { %1550 = vmatpush.bf16.msrb.mxu3 %v2098_v18 }
 0x172   : > { %1565 = vmatpush.bf16.msra.mxu0 %v2146_v15  ;;  %1540 = vmatmul.bf16.vlgmr.msrb.gmra.mxu2 %v3219_v44  ;;  %v2207_v44 = vld [vmem:[%s3432_s5 + $0x288] sm:$0xf0] }
 0x173   : > { %v2210_v30 = vor.u32 %v2400_v28, %v2207_v44 }
 0x174   : > { %1576 = vmatpush.bf16.msra.mxu1 %v2226_v21 }
 0x175   : > { %1566 = vmatmul.bf16.vlgmr.msra.gmra.mxu0 %v3300_v35  ;;  %1551 = vmatpush.bf16.msrb.mxu3 %v2090_v14 }
 0x178   : > { %1577 = vmatpush.bf16.msra.mxu1 %v2218_v27 }
 0x179   : > { %1552 = vmatpush.bf16.msrb.mxu3 %v2082_v29 }
 0x17c   : > { %1578 = vmatpush.bf16.msra.mxu1 %v2210_v30  ;;  %1553 = vmatmul.bf16.vlgmr.msrb.gmra.mxu3 %v3279_v23 }
 0x17f   : > { %1579 = vmatmul.bf16.vlgmr.msra.gmra.mxu1 %v941_v9 }
 0x1d2   : > { %v1463_v31 = vpop.f32.mrf.mxu0 }
 0x1d5   : > { %v1437_v32 = vpop.f32.mrf.mxu2 }
 0x1d6   : > { %v1438_v41 = vadd.f32 %v1437_v32, %v896_v37 }
 0x1da   : > { %v1465_v33 = vpop.f32.mrf.mxu0 }
 0x1dc   : > { %v1476_v35 = vpop.f32.mrf.mxu1 }
 0x1dd   : > { %v1439_v36 = vpop.f32.mrf.mxu2 }
 0x1df   : > { %v1450_v39 = vpop.f32.mrf.mxu3 }
 0x1e0   : > { %v1451_v43 = vadd.f32 %v1450_v39, %v1438_v41 }
 0x1e2   : > { %v1515_v40 = vpop.f32.mrf.mxu0  ;;  %v1464_v47 = vadd.f32 %v1463_v31, %v1451_v43 }
 0x1e3   : > { %v1516_v60 = vadd.f32 %v1515_v40, %v897_v56 }
 0x1e4   : > { %v1478_v42 = vpop.f32.mrf.mxu1  ;;  %v1477_v49 = vadd.f32 %v1476_v35, %v1464_v47 }
 0x1e5   : > { %v1489_v45 = vpop.f32.mrf.mxu2 }
 0x1e6   : > { %v1490_v52 = vadd.f32 %v1489_v45, %v1477_v49 }
 0x1e7   : > { %v1452_v46 = vpop.f32.mrf.mxu3 }
 0x1ea   : > { %v1517_v23 = vpop.f32.mrf.mxu0 }
 0x1ec   : > { %v1528_v48 = vpop.f32.mrf.mxu1 }
 0x1ed   : > { %v1491_v50 = vpop.f32.mrf.mxu2  ;;  %v1529_v62 = vadd.f32 %v1528_v48, %v1516_v60 }
 0x1ef   : > { %v1502_v51 = vpop.f32.mrf.mxu3 }
 0x1f0   : > { %v1503_v54 = vadd.f32 %v1502_v51, %v1490_v52 }
 0x1f2   : > { %v1567_v53 = vpop.f32.mrf.mxu0  ;;  %v2267_v57 = vmul.f32 -1.442695, %v1503_v54 }
 0x1f4   : > { %v1530_v55 = vpop.f32.mrf.mxu1  ;;  %2425 = vpow2.f32 %v2267_v57 }
 0x1f5   : > { %v1541_v38 = vpop.f32.mrf.mxu2 }
 0x1f6   : > { %v1542_v0 = vadd.f32 %v1541_v38, %v1529_v62 }
 0x1f7   : > { %v1504_v58 = vpop.f32.mrf.mxu3 }
 0x1fa   : > { %v1569_v59 = vpop.f32.mrf.mxu0  ;;  %v2426_v2 = vpop.eup %2425 }
 0x1fb   : > { %v1590_v5 = vadd.f32 1.0, %v2426_v2 }
 0x1fc   : > { %v1580_v61 = vpop.f32.mrf.mxu1 }
 0x1fd   : > { %v1543_v63 = vpop.f32.mrf.mxu2  ;;  %2427 = vrcp.f32 %v1590_v5  ;;  %vm1597_vm5 = vweird.f32 %v1590_v5  ;;  %v1603_v14 = vand.u32 2147483648, %v1590_v5  ;;  %v1601_v26 = vand.u32 2147483647, %v1590_v5 }
 0x1ff   : > { %v1554_v1 = vpop.f32.mrf.mxu3  ;;  %v1604_v30 = vor.u32 1.1754944e-38, %v1603_v14  ;;  %vm1602_vm10 = vcmp.eq.f32.partialorder %v1601_v26, 8.507059e+37 }
 0x200   : > { %v1555_v3 = vadd.f32 %v1554_v1, %v1542_v0 }
 0x202   : > { %v1568_v4 = vadd.f32 %v1567_v53, %v1555_v3 }
 0x203   : > { %v2428_v10 = vpop.eup %2427 }
 0x204   : > { %v1582_v6 = vpop.f32.mrf.mxu1  ;;  %v1581_v7 = vadd.f32 %v1580_v61, %v1568_v4  ;;  %v1593_v13 = vmul.f32 %v2428_v10, %v1590_v5  ;;  %vm1598_vm3 = vweird.f32 %v2428_v10 }
 0x205   : > { %vm3413_vm6 = vmor %vm1597_vm5, %vm1598_vm3 }
 0x206   : > { %v2268_v8 = vmul.f32 -1.442695, %v1581_v7  ;;  %v1594_v15 = vsub.f32 1.0, %v1593_v13 }
 0x207   : > { %v1556_v9 = vpop.f32.mrf.mxu3 }
 0x208   : > { %2429 = vpow2.f32 %v2268_v8  ;;  %v1595_v17 = vmul.f32 %v2428_v10, %v1594_v15 }
 0x20a   : > { %v1596_v21 = vadd.f32 %v2428_v10, %v1595_v17 }
 0x20c   : > { %v1600_v44 = vsel %vm3413_vm6, %v2428_v10, %v1596_v21 }
 0x20d   : > { %v1605_v33 = vsel %vm1602_vm10, %v1604_v30, %v1600_v44 }
 0x20e   : > { %v2430_v11 = vpop.eup %2429 }
 0x20f   : > { %v1591_v12 = vadd.f32 1.0, %v2430_v11 }
 0x211   : > { %2431 = vrcp.f32 %v1591_v12  ;;  %v1618_v20 = vand.u32 2147483648, %v1591_v12  ;;  %v1616_v24 = vand.u32 2147483647, %v1591_v12  ;;  %vm1612_vm7 = vweird.f32 %v1591_v12 }
 0x213   : > { %v1619_v28 = vor.u32 1.1754944e-38, %v1618_v20  ;;  %vm1617_vm9 = vcmp.eq.f32.partialorder %v1616_v24, 8.507059e+37 }
 0x217   : > { %v2432_v16 = vpop.eup %2431 }
 0x218   : > { %v1608_v18 = vmul.f32 %v2432_v16, %v1591_v12  ;;  %vm1613_vm4 = vweird.f32 %v2432_v16 }
 0x219   : > { %vm1614_vm8 = vmor %vm1612_vm7, %vm1613_vm4 }
 0x21a   : > { %v1609_v19 = vsub.f32 1.0, %v1608_v18 }
 0x21c   : > { %v1610_v22 = vmul.f32 %v2432_v16, %v1609_v19 }
 0x21e   : > { %v1611_v27 = vadd.f32 %v2432_v16, %v1610_v22 }
 0x220   : > { %v1615_v29 = vsel %vm1614_vm8, %v2432_v16, %v1611_v27 }
 0x221   : > { %v1620_v31 = vsel %vm1617_vm9, %v1619_v28, %v1615_v29 }
 0x222   : > { %v1624_v32 = vrot.slane %v1620_v31, 4 }
 0x224   : > { %v1625_v34 = vsel %vm302_vm0, %v1605_v33, %v1624_v32 }
 0x225   : > { %1627 = vst [vmem:[%s272_s30] sm:$0xff] %v1625_v34 }
 0x226 PF: > { %s17_s24 = sadd.s32 1, %s2439_s24  }
 0x227   : > { %p14_p4 = scmp.ge.s32.totalorder %s17_s24, 4  }
 0x229   :  { %16 = sbr.rel (!%p14_p4) target bundleno = 1 (0x1), region = 79 }

</bundles_post_ra>
